<compile_context>
chip_gen: v7x
topology: tpu7x:2x2x1
jax: 0.10.0
libtpu: 0.0.40
codegen_flags: <defaults>
</compile_context>

<pallas_src>
import jax
import jax.numpy as jnp
from jax.experimental import pallas as pl
from jax.experimental.pallas import tpu as pltpu

INPUT_SIZE = 6          # gait state inputs
NUM_PRED = 6            # covariance outputs
DIM_VAL = 512           # latent dim (PyTorch HeteroscedasticModel default)
N_HIDDEN = 2            # hidden Linear+GELU layers (hard-unrolled in kernel)
K_PAD = 8               # input features padded to one sublane tile (NOT 128)
OUT_PAD = 8             # output features padded only to 8 lanes (was 128)
DEFAULT_TILE_M = 2048   # rows per grid step; sweepable 1024-4096


def _gelu(x):
    # TODO(synk): nn.GELU() default is the exact erf-based GELU; the tanh
    # approximation (~1e-3 abs) is used since it lowers cleanly to VPU+EUP.
    # Python-float constants keep the math in x's dtype (bf16 on v6e/v7x).
    c = 0.7978845608028654  # sqrt(2/pi)
    return 0.5 * x * (1.0 + jnp.tanh(c * (x + 0.044715 * (x * x * x))))


def _mlp_kernel(x_ref,
                w_emb_ref, b_emb_ref,
                w_h0_ref, b_h0_ref,
                w_h1_ref, b_h1_ref,
                w_out_ref, b_out_ref,
                o_ref):
    b_emb = b_emb_ref[...]
    act = b_emb.dtype                       # bf16 on v6e/v7x, f32 elsewhere
    # embedding layer (no activation): K=8 bf16 MXU matmul, f32 accumulation
    h = jnp.dot(x_ref[...].astype(jnp.bfloat16), w_emb_ref[...],
                preferred_element_type=jnp.float32).astype(act) + b_emb
    # hidden layers: bf16 MXU matmuls with f32 acc; bias-add + GELU in `act`
    h = _gelu(jnp.dot(h.astype(jnp.bfloat16), w_h0_ref[...],
                      preferred_element_type=jnp.float32).astype(act)
              + b_h0_ref[...])
    h = _gelu(jnp.dot(h.astype(jnp.bfloat16), w_h1_ref[...],
                      preferred_element_type=jnp.float32).astype(act)
              + b_h1_ref[...])
    # output layer (no activation): f32 result, only 8 padded output lanes
    o_ref[...] = jnp.dot(h.astype(jnp.bfloat16), w_out_ref[...],
                         preferred_element_type=jnp.float32) + b_out_ref[...]


def init_params(key):
    """Deterministic PyTorch-Linear-style init (uniform +/- 1/sqrt(fan_in))."""
    def linear(k, fan_in, fan_out):
        kw, kb = jax.random.split(k)
        bound = 1.0 / jnp.sqrt(jnp.float32(fan_in))
        w = jax.random.uniform(kw, (fan_in, fan_out), jnp.float32, -bound, bound)
        b = jax.random.uniform(kb, (fan_out,), jnp.float32, -bound, bound)
        return w, b

    keys = jax.random.split(key, 2 + N_HIDDEN)
    return {
        "emb": linear(keys[0], INPUT_SIZE, DIM_VAL),
        "h0": linear(keys[1], DIM_VAL, DIM_VAL),
        "h1": linear(keys[2], DIM_VAL, DIM_VAL),
        "out": linear(keys[3], DIM_VAL, NUM_PRED),
    }


def _default_act_dtype():
    # bf16 elementwise math (bias add + GELU) only where the VPU has native
    # bf16 (v6e / v7x); keep the f32 path on v5e and unknown chips.
    try:
        kind = jax.devices()[0].device_kind.lower()
    except Exception:
        return jnp.float32
    return jnp.bfloat16 if ("v6" in kind or "v7" in kind) else jnp.float32


def pack_params(params, act_dtype=None):
    """Pad + cast parameters ONCE at init time (not per forward call)."""
    if act_dtype is None:
        act_dtype = _default_act_dtype()
    w_emb, b_emb = params["emb"]
    w_h0, b_h0 = params["h0"]
    w_h1, b_h1 = params["h1"]
    w_out, b_out = params["out"]

    # zero-padded rows/cols do not change the matmul results
    w_emb_p = (jnp.zeros((K_PAD, DIM_VAL), jnp.float32)
               .at[:INPUT_SIZE, :].set(w_emb)).astype(jnp.bfloat16)
    w_out_p = (jnp.zeros((DIM_VAL, OUT_PAD), jnp.float32)
               .at[:, :NUM_PRED].set(w_out)).astype(jnp.bfloat16)
    b_out_p = jnp.zeros((1, OUT_PAD), jnp.float32).at[0, :NUM_PRED].set(b_out)
    return {
        "w_emb": w_emb_p,
        "b_emb": b_emb.reshape(1, DIM_VAL).astype(act_dtype),
        "w_h0": w_h0.astype(jnp.bfloat16),
        "b_h0": b_h0.reshape(1, DIM_VAL).astype(act_dtype),
        "w_h1": w_h1.astype(jnp.bfloat16),
        "b_h1": b_h1.reshape(1, DIM_VAL).astype(act_dtype),
        "w_out": w_out_p,
        "b_out": b_out_p,                     # f32: output stays f32
    }


def heteroscedastic_forward(x, packed, *, tile_m=DEFAULT_TILE_M):
    """x: (batch, seq, INPUT_SIZE) f32 -> (batch, seq, NUM_PRED) f32."""
    batch, seq, feat = x.shape
    assert feat == INPUT_SIZE
    M = batch * seq

    # Row tile: multiple of 8, capped at ceil(M/2) so grid_m >= 2 whenever
    # possible (keeps both v7x TensorCores busy via the "parallel" axis).
    half = ((-(-M // 2)) + 7) // 8 * 8
    tile = max(8, min(((int(tile_m) + 7) // 8) * 8, half))
    M_pad = -(-M // tile) * tile
    grid_m = M_pad // tile

    # HBM-side input: features padded only 6 -> 8 (last block dim equals the
    # full array dim, so the (8,128) rule holds), rows zero-padded to M_pad.
    x2 = x.reshape(M, INPUT_SIZE).astype(jnp.float32)
    x_pad = jnp.zeros((M_pad, K_PAD), jnp.float32).at[:M, :INPUT_SIZE].set(x2)

    def resident(shape):
        # Constant index_map -> fetched once, stays VMEM-resident across steps.
        return pl.BlockSpec(shape, lambda i: (0, 0))

    in_specs = [
        pl.BlockSpec((tile, K_PAD), lambda i: (i, 0)),
        resident((K_PAD, DIM_VAL)), resident((1, DIM_VAL)),
        resident((DIM_VAL, DIM_VAL)), resident((1, DIM_VAL)),
        resident((DIM_VAL, DIM_VAL)), resident((1, DIM_VAL)),
        resident((DIM_VAL, OUT_PAD)), resident((1, OUT_PAD)),
    ]

    flops = 2 * M_pad * (K_PAD * DIM_VAL + N_HIDDEN * DIM_VAL * DIM_VAL
                         + DIM_VAL * OUT_PAD)
    transcendentals = N_HIDDEN * M_pad * DIM_VAL
    bytes_accessed = (M_pad * K_PAD * 4 + M_pad * OUT_PAD * 4
                      + K_PAD * DIM_VAL * 2 + N_HIDDEN * DIM_VAL * DIM_VAL * 2
                      + DIM_VAL * OUT_PAD * 2 + (N_HIDDEN + 1) * DIM_VAL * 4
                      + OUT_PAD * 4)

    out_pad = pl.pallas_call(
        _mlp_kernel,
        out_shape=jax.ShapeDtypeStruct((M_pad, OUT_PAD), jnp.float32),
        grid=(grid_m,),
        in_specs=in_specs,
        out_specs=pl.BlockSpec((tile, OUT_PAD), lambda i: (i, 0)),
        compiler_params=pltpu.CompilerParams(
            dimension_semantics=("parallel",),
            # headroom for (tile, 512) intermediates at tile_m=2048; also
            # lifts v5e's conservative 16 MiB scoped default.
            vmem_limit_bytes=32 * 1024 * 1024),
        cost_estimate=pl.CostEstimate(
            flops=flops,
            transcendentals=transcendentals,
            bytes_accessed=bytes_accessed),
    )(x_pad, packed["w_emb"], packed["b_emb"],
      packed["w_h0"], packed["b_h0"],
      packed["w_h1"], packed["b_h1"],
      packed["w_out"], packed["b_out"])

    return out_pad[:M, :NUM_PRED].reshape(batch, seq, NUM_PRED)


def _reference_forward(x, params):
    w_emb, b_emb = params["emb"]
    w_h0, b_h0 = params["h0"]
    w_h1, b_h1 = params["h1"]
    w_out, b_out = params["out"]
    h = x @ w_emb + b_emb
    h = _gelu(h @ w_h0 + b_h0)
    h = _gelu(h @ w_h1 + b_h1)
    return h @ w_out + b_out


if __name__ == "__main__":
    key = jax.random.PRNGKey(0)
    kp, kx = jax.random.split(key)
    params = init_params(kp)
    packed = pack_params(params)   # pad/cast once, outside the jitted forward

    batch, seq = 2, 8
    x = jax.random.normal(kx, (batch, seq, INPUT_SIZE), jnp.float32)

    fwd = jax.jit(heteroscedastic_forward)
    out = jax.block_until_ready(fwd(x, packed))

    ref = _reference_forward(x, params)
    assert out.shape == (batch, seq, NUM_PRED)
    # bf16 weights/activations (with f32 MXU accumulation) drift a few 1e-3
    # from the pure-f32 reference; tolerance reflects that accepted tradeoff.
    assert jnp.allclose(out, ref, atol=3e-2, rtol=3e-2), (
        float(jnp.max(jnp.abs(out - ref))))

    print("KERNEL_OK")
</pallas_src>

<mosaic_0001>
module attributes {stable_mosaic.version = 11 : i64} {
  func.func @_mlp_kernel(%arg0: i32, %arg1: memref<8x8xf32, #tpu.memory_space<vmem>>, %arg2: memref<8x512xbf16, #tpu.memory_space<vmem>>, %arg3: memref<1x512xf32, #tpu.memory_space<vmem>>, %arg4: memref<512x512xbf16, #tpu.memory_space<vmem>>, %arg5: memref<1x512xf32, #tpu.memory_space<vmem>>, %arg6: memref<512x512xbf16, #tpu.memory_space<vmem>>, %arg7: memref<1x512xf32, #tpu.memory_space<vmem>>, %arg8: memref<512x8xbf16, #tpu.memory_space<vmem>>, %arg9: memref<1x8xf32, #tpu.memory_space<vmem>>, %arg10: memref<8x8xf32, #tpu.memory_space<vmem>>) attributes {dimension_semantics = [#tpu.dimension_semantics<parallel>], iteration_bounds = array<i64: 2>, scalar_prefetch = 0 : i64, scratch_operands = 0 : i64, tpu.core_type = #tpu.core_type<tc>, window_params = [{transform_indices = @transform_0, window_bounds = array<i64: 8, 8>}, {pipeline_mode = #tpu.pipeline_mode<synchronous>, transform_indices = @transform_1, window_bounds = array<i64: 8, 512>}, {pipeline_mode = #tpu.pipeline_mode<synchronous>, transform_indices = @transform_2, window_bounds = array<i64: 1, 512>}, {pipeline_mode = #tpu.pipeline_mode<synchronous>, transform_indices = @transform_3, window_bounds = array<i64: 512, 512>}, {pipeline_mode = #tpu.pipeline_mode<synchronous>, transform_indices = @transform_4, window_bounds = array<i64: 1, 512>}, {pipeline_mode = #tpu.pipeline_mode<synchronous>, transform_indices = @transform_5, window_bounds = array<i64: 512, 512>}, {pipeline_mode = #tpu.pipeline_mode<synchronous>, transform_indices = @transform_6, window_bounds = array<i64: 1, 512>}, {pipeline_mode = #tpu.pipeline_mode<synchronous>, transform_indices = @transform_7, window_bounds = array<i64: 512, 8>}, {pipeline_mode = #tpu.pipeline_mode<synchronous>, transform_indices = @transform_8, window_bounds = array<i64: 1, 8>}, {transform_indices = @transform_9, window_bounds = array<i64: 8, 8>}]} {
    %c0 = arith.constant 0 : index
    %c0_0 = arith.constant 0 : index
    %0 = vector.load %arg3[%c0, %c0_0] : memref<1x512xf32, #tpu.memory_space<vmem>>, vector<1x512xf32>
    %c0_1 = arith.constant 0 : index
    %c0_2 = arith.constant 0 : index
    %1 = vector.load %arg1[%c0_1, %c0_2] : memref<8x8xf32, #tpu.memory_space<vmem>>, vector<8x8xf32>
    %2 = arith.truncf %1 : vector<8x8xf32> to vector<8x8xbf16>
    %c0_3 = arith.constant 0 : index
    %c0_4 = arith.constant 0 : index
    %3 = vector.load %arg2[%c0_3, %c0_4] : memref<8x512xbf16, #tpu.memory_space<vmem>>, vector<8x512xbf16>
    %cst = arith.constant dense<0.000000e+00> : vector<8x512xf32>
    %4 = tpu.matmul %2, %3, %cst {dimension_numbers = #tpu.dot_dimension_numbers<[1], [0], [0], [1], [0, 0, 1, 1], [], []>} : vector<8x8xbf16>, vector<8x512xbf16>, vector<8x512xf32> -> vector<8x512xf32>
    %5 = vector.broadcast %0 : vector<1x512xf32> to vector<8x512xf32>
    %6 = arith.addf %4, %5 : vector<8x512xf32>
    %7 = arith.truncf %6 : vector<8x512xf32> to vector<8x512xbf16>
    %c0_5 = arith.constant 0 : index
    %c0_6 = arith.constant 0 : index
    %8 = vector.load %arg4[%c0_5, %c0_6] : memref<512x512xbf16, #tpu.memory_space<vmem>>, vector<512x512xbf16>
    %cst_7 = arith.constant dense<0.000000e+00> : vector<8x512xf32>
    %9 = tpu.matmul %7, %8, %cst_7 {dimension_numbers = #tpu.dot_dimension_numbers<[1], [0], [0], [1], [0, 0, 1, 1], [], []>} : vector<8x512xbf16>, vector<512x512xbf16>, vector<8x512xf32> -> vector<8x512xf32>
    %c0_8 = arith.constant 0 : index
    %c0_9 = arith.constant 0 : index
    %10 = vector.load %arg5[%c0_8, %c0_9] : memref<1x512xf32, #tpu.memory_space<vmem>>, vector<1x512xf32>
    %11 = vector.broadcast %10 : vector<1x512xf32> to vector<8x512xf32>
    %12 = arith.addf %9, %11 : vector<8x512xf32>
    %cst_10 = arith.constant 5.000000e-01 : f32
    %13 = vector.broadcast %cst_10 : f32 to vector<8x512xf32>
    %14 = arith.mulf %13, %12 : vector<8x512xf32>
    %15 = arith.mulf %12, %12 : vector<8x512xf32>
    %16 = arith.mulf %15, %12 : vector<8x512xf32>
    %cst_11 = arith.constant 4.471500e-02 : f32
    %17 = vector.broadcast %cst_11 : f32 to vector<8x512xf32>
    %18 = arith.mulf %17, %16 : vector<8x512xf32>
    %19 = arith.addf %12, %18 : vector<8x512xf32>
    %cst_12 = arith.constant 0.797884583 : f32
    %20 = vector.broadcast %cst_12 : f32 to vector<8x512xf32>
    %21 = arith.mulf %20, %19 : vector<8x512xf32>
    %22 = math.tanh %21 : vector<8x512xf32>
    %cst_13 = arith.constant 1.000000e+00 : f32
    %23 = vector.broadcast %cst_13 : f32 to vector<8x512xf32>
    %24 = arith.addf %23, %22 : vector<8x512xf32>
    %25 = arith.mulf %14, %24 : vector<8x512xf32>
    %26 = arith.truncf %25 : vector<8x512xf32> to vector<8x512xbf16>
    %c0_14 = arith.constant 0 : index
    %c0_15 = arith.constant 0 : index
    %27 = vector.load %arg6[%c0_14, %c0_15] : memref<512x512xbf16, #tpu.memory_space<vmem>>, vector<512x512xbf16>
    %cst_16 = arith.constant dense<0.000000e+00> : vector<8x512xf32>
    %28 = tpu.matmul %26, %27, %cst_16 {dimension_numbers = #tpu.dot_dimension_numbers<[1], [0], [0], [1], [0, 0, 1, 1], [], []>} : vector<8x512xbf16>, vector<512x512xbf16>, vector<8x512xf32> -> vector<8x512xf32>
    %c0_17 = arith.constant 0 : index
    %c0_18 = arith.constant 0 : index
    %29 = vector.load %arg7[%c0_17, %c0_18] : memref<1x512xf32, #tpu.memory_space<vmem>>, vector<1x512xf32>
    %30 = vector.broadcast %29 : vector<1x512xf32> to vector<8x512xf32>
    %31 = arith.addf %28, %30 : vector<8x512xf32>
    %cst_19 = arith.constant 5.000000e-01 : f32
    %32 = vector.broadcast %cst_19 : f32 to vector<8x512xf32>
    %33 = arith.mulf %32, %31 : vector<8x512xf32>
    %34 = arith.mulf %31, %31 : vector<8x512xf32>
    %35 = arith.mulf %34, %31 : vector<8x512xf32>
    %cst_20 = arith.constant 4.471500e-02 : f32
    %36 = vector.broadcast %cst_20 : f32 to vector<8x512xf32>
    %37 = arith.mulf %36, %35 : vector<8x512xf32>
    %38 = arith.addf %31, %37 : vector<8x512xf32>
    %cst_21 = arith.constant 0.797884583 : f32
    %39 = vector.broadcast %cst_21 : f32 to vector<8x512xf32>
    %40 = arith.mulf %39, %38 : vector<8x512xf32>
    %41 = math.tanh %40 : vector<8x512xf32>
    %cst_22 = arith.constant 1.000000e+00 : f32
    %42 = vector.broadcast %cst_22 : f32 to vector<8x512xf32>
    %43 = arith.addf %42, %41 : vector<8x512xf32>
    %44 = arith.mulf %33, %43 : vector<8x512xf32>
    %45 = arith.truncf %44 : vector<8x512xf32> to vector<8x512xbf16>
    %c0_23 = arith.constant 0 : index
    %c0_24 = arith.constant 0 : index
    %46 = vector.load %arg8[%c0_23, %c0_24] : memref<512x8xbf16, #tpu.memory_space<vmem>>, vector<512x8xbf16>
    %cst_25 = arith.constant dense<0.000000e+00> : vector<8x8xf32>
    %47 = tpu.matmul %45, %46, %cst_25 {dimension_numbers = #tpu.dot_dimension_numbers<[1], [0], [0], [1], [0, 0, 1, 1], [], []>} : vector<8x512xbf16>, vector<512x8xbf16>, vector<8x8xf32> -> vector<8x8xf32>
    %c0_26 = arith.constant 0 : index
    %c0_27 = arith.constant 0 : index
    %48 = vector.load %arg9[%c0_26, %c0_27] : memref<1x8xf32, #tpu.memory_space<vmem>>, vector<1x8xf32>
    %49 = vector.broadcast %48 : vector<1x8xf32> to vector<8x8xf32>
    %50 = arith.addf %47, %49 : vector<8x8xf32>
    %c0_28 = arith.constant 0 : index
    %c0_29 = arith.constant 0 : index
    %51 = vector.load %arg10[%c0_28, %c0_29] : memref<8x8xf32, #tpu.memory_space<vmem>>, vector<8x8xf32>
    tpu.vector_store %arg10[%c0_28, %c0_29], %50 {strides = array<i32>} : memref<8x8xf32, #tpu.memory_space<vmem>>, vector<8x8xf32>,
    return
  }
  func.func @transform_0(%arg0: i32) -> (i32, i32) {
    %c0_i32 = arith.constant 0 : i32
    %c0_i32_0 = arith.constant 0 : i32
    return %arg0, %c0_i32 : i32, i32
  }
  func.func @transform_1(%arg0: i32) -> (i32, i32) {
    %c0_i32 = arith.constant 0 : i32
    %c0_i32_0 = arith.constant 0 : i32
    %c0_i32_1 = arith.constant 0 : i32
    return %c0_i32, %c0_i32_0 : i32, i32
  }
  func.func @transform_2(%arg0: i32) -> (i32, i32) {
    %c0_i32 = arith.constant 0 : i32
    %c0_i32_0 = arith.constant 0 : i32
    %c0_i32_1 = arith.constant 0 : i32
    return %c0_i32, %c0_i32_0 : i32, i32
  }
  func.func @transform_3(%arg0: i32) -> (i32, i32) {
    %c0_i32 = arith.constant 0 : i32
    %c0_i32_0 = arith.constant 0 : i32
    %c0_i32_1 = arith.constant 0 : i32
    return %c0_i32, %c0_i32_0 : i32, i32
  }
  func.func @transform_4(%arg0: i32) -> (i32, i32) {
    %c0_i32 = arith.constant 0 : i32
    %c0_i32_0 = arith.constant 0 : i32
    %c0_i32_1 = arith.constant 0 : i32
    return %c0_i32, %c0_i32_0 : i32, i32
  }
  func.func @transform_5(%arg0: i32) -> (i32, i32) {
    %c0_i32 = arith.constant 0 : i32
    %c0_i32_0 = arith.constant 0 : i32
    %c0_i32_1 = arith.constant 0 : i32
    return %c0_i32, %c0_i32_0 : i32, i32
  }
  func.func @transform_6(%arg0: i32) -> (i32, i32) {
    %c0_i32 = arith.constant 0 : i32
    %c0_i32_0 = arith.constant 0 : i32
    %c0_i32_1 = arith.constant 0 : i32
    return %c0_i32, %c0_i32_0 : i32, i32
  }
  func.func @transform_7(%arg0: i32) -> (i32, i32) {
    %c0_i32 = arith.constant 0 : i32
    %c0_i32_0 = arith.constant 0 : i32
    %c0_i32_1 = arith.constant 0 : i32
    return %c0_i32, %c0_i32_0 : i32, i32
  }
  func.func @transform_8(%arg0: i32) -> (i32, i32) {
    %c0_i32 = arith.constant 0 : i32
    %c0_i32_0 = arith.constant 0 : i32
    %c0_i32_1 = arith.constant 0 : i32
    return %c0_i32, %c0_i32_0 : i32, i32
  }
  func.func @transform_9(%arg0: i32) -> (i32, i32) {
    %c0_i32 = arith.constant 0 : i32
    %c0_i32_0 = arith.constant 0 : i32
    return %arg0, %c0_i32 : i32, i32
  }
}

</mosaic_0001>

<bundles_post_ra>
// kernel: heteroscedastic_forward.1
= control target key start
LH: loop header
LB: loop body
LE: loop exit
PB: predicated region body
PF: predicated region fallthrough
CT: control target
= control target key end

     0   :  { %14 = vsyncpa [#allocation3], 0  ;;  %s4146_s0 = inlined_call_operand.vmem [shape: f32[16,8], index: 0, kind: input, shape index: {}]   ;;  %s4147_s1 = inlined_call_operand.vmem [shape: bf16[8,512], index: 1, kind: input, shape index: {}]   ;;  %s4148_s2 = inlined_call_operand.vmem [shape: f32[1,512], index: 2, kind: input, shape index: {}]   ;;  %s4149_s3 = inlined_call_operand.hbm [shape: bf16[512,512], index: 3, kind: input, shape index: {}]   ;;  %s4150_s4 = inlined_call_operand.vmem [shape: f32[1,512], index: 4, kind: input, shape index: {}]   ;;  %s4151_s5 = inlined_call_operand.hbm [shape: bf16[512,512], index: 5, kind: input, shape index: {}]   ;;  %s4152_s6 = inlined_call_operand.vmem [shape: f32[1,512], index: 6, kind: input, shape index: {}]   ;;  %s4153_s7 = inlined_call_operand.vmem [shape: bf16[512,8], index: 7, kind: input, shape index: {}]   ;;  %s4154_s8 = inlined_call_operand.vmem [shape: f32[1,8], index: 8, kind: input, shape index: {}]   ;;  %s4155_s9 = inlined_call_operand.vmem [shape: f32[16,8], index: 9, kind: output, shape index: {}]  }
   0x1   :  { %15 = vsyncpa [#allocation5], 0  ;;  %s3878_s30 = smov 0  }
   0x2 LB: > { %s3884_s10 = sadd.s32 4294967295, %s3821_s30   ;;  %p2907_p0 = scmp.ge.s32.totalorder %s3821_s30, 1  ;;  %s3821_s30 = sphi %s3878_s30, %s21_s30  }
   0x3   : > { %p246_p1 = scmp.lt.s32.totalorder %s3821_s30, 3  ;;  %s3823_s11 = smov [#allocation2]  }
   0x4   : > { %s264_s12 = sshll.u32 %s3823_s11, 4  ;;  %p4156_p3 = scmp.eq.s32.totalorder %s3884_s10, 0  ;;  %s265_s12 = int_to_ptr.vmem [resolvable:$true] %s264_s12 }
   0x5   : > { %p3888_p2 = pnand %p2907_p0, %p246_p1  ;;  %s3824_s14 = smov [#allocation4]  }
   0x6   : > { %s280_s15 = sshll.u32 %s3824_s14, 4  ;;  %s3751_s19 = scalar_lea.hbm %s4149_s3, 16384  ;;  %s3901_s15 = int_to_ptr.vmem [resolvable:$true] %s280_s15 }
   0x7   : > { %s4158_s13 = scalar_select %p3888_p2, 1, 0 }
   0x8   : > { %p3291_p4 = pneg %p3888_p2  ;;  %p3752_p6 = scmp.ne.s32.totalorder %s4149_s3, %s3751_s19 }
   0x9   : > { %p3758_p10 = scmp.lt.u32.totalorder %s3751_s19, %s4149_s3 }
   0xa   : > { %p3897_p5 = pnand %p4156_p3, %p3291_p4 }
   0xc   : > { %p3753_p7 = pneg %p3897_p5 }
   0xe   : > { %p3754_p8 = pnand %p3753_p7, %p3752_p6 }
  0x10   : > { %p3755_p9 = pneg %p3754_p8 }
  0x12   : > { %p3760_p11 = pnand %p3758_p10, %p3755_p9 }
  0x14   : > { %3763 = shalt.err (!%p3760_p11)
}
  0x15   : > { %s3764_s24 = scalar_lea.vmem %s265_s12, 16384  ;;  %p3772_p1 = scmp.lt.s32.totalorder %s265_s12, %s265_s12 }
  0x16   : > { %p3765_p12 = scmp.ne.s32.totalorder %s265_s12, %s3764_s24  ;;  %p3773_p4 = scmp.lt.s32.totalorder %s3764_s24, %s3764_s24 }
  0x18   : > { %p3767_p13 = pnand %p3765_p12, %p3753_p7  ;;  %p3774_p3 = por %p3773_p4, %p3772_p1 }
  0x1a   : > { %p3768_p0 = pneg %p3767_p13 }
  0x1c   : > { %p3775_p2 = pnand %p3774_p3, %p3768_p0 }
  0x1e   : > { %3778 = shalt.err (!%p3775_p2)
}
  0x1f   : > { %s3825_s25 = smov 256   ;;  %s3826_s26 = smov 16  }
  0x20   : > { %3294 = dma.hbm_to_vmem [thread:$0]  (!%p3897_p5), %s4149_s3, 16384, %s265_s12, [#allocation3], %s3825_s25, %s3825_s25, %s3826_s26  }
  0x21   : > { %s3779_s14 = scalar_lea.hbm %s4151_s5, 16384 }
  0x22   : > { %p3780_p6 = scmp.ne.s32.totalorder %s4151_s5, %s3779_s14  ;;  %p3786_p8 = scmp.lt.u32.totalorder %s3779_s14, %s4151_s5 }
  0x24   : > { %p3782_p2 = pnand %p3780_p6, %p3753_p7 }
  0x26   : > { %p3783_p3 = pneg %p3782_p2 }
  0x28   : > { %p3788_p9 = pnand %p3786_p8, %p3783_p3 }
  0x2a   : > { %3791 = shalt.err (!%p3788_p9)
}
  0x2b   : > { %s3792_s12 = scalar_lea.vmem %s3901_s15, 16384  ;;  %p3800_p13 = scmp.lt.s32.totalorder %s3901_s15, %s3901_s15 }
  0x2c   : > { %p3793_p10 = scmp.ne.s32.totalorder %s3901_s15, %s3792_s12  ;;  %p3801_p0 = scmp.lt.s32.totalorder %s3792_s12, %s3792_s12 }
  0x2e   : > { %p3795_p11 = pnand %p3793_p10, %p3753_p7  ;;  %p3802_p1 = por %p3801_p0, %p3800_p13 }
  0x30   : > { %p3796_p12 = pneg %p3795_p11 }
  0x32   : > { %p3803_p4 = pnand %p3802_p1, %p3796_p12 }
  0x34   : > { %3806 = shalt.err (!%p3803_p4)
}
  0x35   : > { %3297 = dma.hbm_to_vmem [thread:$0]  (!%p3897_p5), %s4151_s5, 16384, %s3901_s15, [#allocation5], %s3825_s25, %s3825_s25, %s3826_s26  }
  0x36   : > { %p4160_p6 = scmp.ne.s32.totalorder %s4158_s13, 0 }
  0x37   : > { %p4161_p2 = scmp.eq.s32.totalorder (!%p4160_p6), %s3884_s10, 0 }
  0x38   : > { %312 = sbr.rel (%p4160_p6) target bundleno = 1128 (0x468), region = 56 }
  0x3f   : > { %3812 = dma.done.wait (%p4161_p2), [#allocation3], 16384   ;;  %p4162_p7 = pmov %p4161_p2 }
  0x40   : > { %p4163_p3 = pmov %p4161_p2 }
  0x41   : > { %3814 = vsyncadd (%p4162_p7), [#allocation3], 4294950912 }
  0x42   : > { %3816 = dma.done.wait (%p4163_p3), [#allocation5], 16384   ;;  %p4164_p8 = pmov %p4161_p2 }
  0x43   : > { %p350_p9 = scmp.lt.s32.totalorder %s3884_s10, 1  ;;  %v3827_v0 = vmov 0   ;;  %v362_v1 = vld [vmem:[%s4147_s1] sm:$0xff]  ;;  %vm399_vm0 = vcmask 1043456   ;;  %v363_v3 = vld [vmem:[%s4147_s1 + $0x8] sm:$0xff]  ;;  %vm395_vm1 = vcmask 64512  }
  0x44   : > { %3818 = vsyncadd (%p4164_p8), [#allocation5], 4294950912  ;;  %444 = vmatprep.mubr.bf16.mxu0 %v3827_v0  ;;  %485 = vmatprep.mubr.bf16.mxu1 %v3827_v0  ;;  %v2917_v4 = vcombine.high %v362_v1, %v362_v1  ;;  %v2916_v5 = vcombine.low %v362_v1, %v362_v1  ;;  %v2919_v6 = vcombine.high %v363_v3, %v363_v3  ;;  %v3321_v8 = vld [vmem:[#allocation2 + $0x4] ss:$16 sps:$4 sm:$0xff]   ;;  %v3324_v11 = vld [vmem:[#allocation2 + $0xc] ss:$16 sps:$4 sm:$0xff]  }
  0x45   : > { %s4166_s10 = smov (!%p350_p9, %s3884_s10), 1  ;;  %v2918_v7 = vcombine.low %v363_v3, %v363_v3  ;;  %v3319_v13 = vld [vmem:[#allocation2] ss:$16 sps:$4 sm:$0xff]   ;;  %v3322_v14 = vld [vmem:[#allocation2 + $0x8] ss:$16 sps:$4 sm:$0xff]  }
  0x46   : > { %s2914_s13 = sshll.u32 %s4166_s10, 3  ;;  %2920 = vmatprep.subr.msk.bf16.mxu0 %vm399_vm0, %v2917_v4  ;;  %v401_v9 = vsel %vm399_vm0, %v2916_v5, 0  ;;  %2922 = vmatprep.subr.msk.bf16.mxu1 %vm399_vm0, %v2919_v6  ;;  %v3327_v15 = vld [vmem:[#allocation2 + $0x24] ss:$16 sps:$4 sm:$0xff]   ;;  %v3330_v16 = vld [vmem:[#allocation2 + $0x2c] ss:$16 sps:$4 sm:$0xff]  }
  0x47   : > { %s353_s23 = scalar_lea.vmem %s4146_s0, %s2914_s13  ;;  %413 = vmatpush1.bf16.msra.mxu0 %v401_v9  ;;  %v407_v12 = vsel %vm399_vm0, %v2918_v7, 0  ;;  %v3325_v17 = vld [vmem:[#allocation2 + $0x20] ss:$16 sps:$4 sm:$0xff]   ;;  %v3328_v18 = vld [vmem:[#allocation2 + $0x28] ss:$16 sps:$4 sm:$0xff]   ;;  %s357_s11 = scalar_lea.vmem %s4155_s9, %s2914_s13 }
  0x48   : > { %v360_v2 = vld [vmem:[%s353_s23] sm:$0xff]  ;;  %454 = vmatpush1.bf16.msra.mxu1 %v407_v12  ;;  %1288 = vmatprep.subr.bf16.mxu0 %v3321_v8  ;;  %v3336_v20 = vld [vmem:[#allocation2 + $0x4c] ss:$16 sps:$4 sm:$0xff]   ;;  %v3334_v22 = vld [vmem:[#allocation2 + $0x48] ss:$16 sps:$4 sm:$0xff]  }
  0x49   : > { %v361_v10 = vpack.c.bf16 %v360_v2, %v360_v2  ;;  %1370 = vmatprep.subr.bf16.mxu1 %v3324_v11  ;;  %v3333_v19 = vld [vmem:[#allocation2 + $0x44] ss:$16 sps:$4 sm:$0xff]   ;;  %v3331_v21 = vld [vmem:[#allocation2 + $0x40] ss:$16 sps:$4 sm:$0xff]   ;;  %v3342_v24 = vld [vmem:[#allocation2 + $0x6c] ss:$16 sps:$4 sm:$0xff]  }
  0x4a   : > { %v3339_v23 = vld [vmem:[#allocation2 + $0x64] ss:$16 sps:$4 sm:$0xff]   ;;  %v3337_v25 = vld [vmem:[#allocation2 + $0x60] ss:$16 sps:$4 sm:$0xff]   ;;  %v3340_v26 = vld [vmem:[#allocation2 + $0x68] ss:$16 sps:$4 sm:$0xff]  }
  0x4b   : > { %2921 = vmatmul.mubr.msk.bf16.vlgmr.msra.gmra.mrb[0].mxu0 %vm395_vm1, %v361_v10  ;;  %2923 = vmatmul.mubr.msk.bf16.vlgmr.msra.gmra.mrb[0].mxu1 %vm395_vm1, %v361_v10  ;;  %v3345_v27 = vld [vmem:[#allocation2 + $0x84] ss:$16 sps:$4 sm:$0xff]   ;;  %v3348_v28 = vld [vmem:[#allocation2 + $0x8c] ss:$16 sps:$4 sm:$0xff]   ;;  %v3343_v29 = vld [vmem:[#allocation2 + $0x80] ss:$16 sps:$4 sm:$0xff]  }
  0x4c   : > { %1289 = vmatpush1.bf16.msra.mxu0 %v3319_v13  ;;  %1371 = vmatpush1.bf16.msra.mxu1 %v3322_v14  ;;  %v3346_v30 = vld [vmem:[#allocation2 + $0x88] ss:$16 sps:$4 sm:$0xff]   ;;  %v3351_v31 = vld [vmem:[#allocation2 + $0xa4] ss:$16 sps:$4 sm:$0xff]   ;;  %v3354_v32 = vld [vmem:[#allocation2 + $0xac] ss:$16 sps:$4 sm:$0xff]   ;;  %v365_v13 = vlaneseq }
  0x4d   : > { %1290 = vmatprep.subr.bf16.mxu0 %v3327_v15  ;;  %1372 = vmatprep.subr.bf16.mxu1 %v3330_v16  ;;  %v3349_v33 = vld [vmem:[#allocation2 + $0xa0] ss:$16 sps:$4 sm:$0xff]   ;;  %v3352_v34 = vld [vmem:[#allocation2 + $0xa8] ss:$16 sps:$4 sm:$0xff]   ;;  %v3357_v35 = vld [vmem:[#allocation2 + $0xc4] ss:$16 sps:$4 sm:$0xff]  }
  0x4e   : > { %v3360_v36 = vld [vmem:[#allocation2 + $0xcc] ss:$16 sps:$4 sm:$0xff]   ;;  %v3355_v37 = vld [vmem:[#allocation2 + $0xc0] ss:$16 sps:$4 sm:$0xff]   ;;  %v3358_v38 = vld [vmem:[#allocation2 + $0xc8] ss:$16 sps:$4 sm:$0xff]  }
  0x4f   : > { %v3363_v39 = vld [vmem:[#allocation2 + $0xe4] ss:$16 sps:$4 sm:$0xff]   ;;  %v3366_v40 = vld [vmem:[#allocation2 + $0xec] ss:$16 sps:$4 sm:$0xff]   ;;  %v3361_v41 = vld [vmem:[#allocation2 + $0xe0] ss:$16 sps:$4 sm:$0xff]  }
  0x50   : > { %1291 = vmatpush1.bf16.msra.mxu0 %v3325_v17  ;;  %1373 = vmatpush1.bf16.msra.mxu1 %v3328_v18  ;;  %v3364_v42 = vld [vmem:[#allocation2 + $0xe8] ss:$16 sps:$4 sm:$0xff]   ;;  %v3369_v43 = vld [vmem:[#allocation2 + $0x104] ss:$16 sps:$4 sm:$0xff]   ;;  %v3372_v44 = vld [vmem:[#allocation2 + $0x10c] ss:$16 sps:$4 sm:$0xff]  }
  0x51   : > { %1292 = vmatprep.subr.bf16.mxu0 %v3333_v19  ;;  %1374 = vmatprep.subr.bf16.mxu1 %v3336_v20  ;;  %v3367_v45 = vld [vmem:[#allocation2 + $0x100] ss:$16 sps:$4 sm:$0xff]   ;;  %v3370_v46 = vld [vmem:[#allocation2 + $0x108] ss:$16 sps:$4 sm:$0xff]   ;;  %v3375_v47 = vld [vmem:[#allocation2 + $0x124] ss:$16 sps:$4 sm:$0xff]  }
  0x52   : > { %v3378_v48 = vld [vmem:[#allocation2 + $0x12c] ss:$16 sps:$4 sm:$0xff]   ;;  %v3373_v49 = vld [vmem:[#allocation2 + $0x120] ss:$16 sps:$4 sm:$0xff]   ;;  %v3376_v50 = vld [vmem:[#allocation2 + $0x128] ss:$16 sps:$4 sm:$0xff]  }
  0x53   : > { %v3381_v51 = vld [vmem:[#allocation2 + $0x144] ss:$16 sps:$4 sm:$0xff]   ;;  %v3384_v52 = vld [vmem:[#allocation2 + $0x14c] ss:$16 sps:$4 sm:$0xff]   ;;  %v3379_v53 = vld [vmem:[#allocation2 + $0x140] ss:$16 sps:$4 sm:$0xff]  }
  0x54   : > { %1293 = vmatpush1.bf16.msra.mxu0 %v3331_v21  ;;  %1375 = vmatpush1.bf16.msra.mxu1 %v3334_v22  ;;  %v3382_v54 = vld [vmem:[#allocation2 + $0x148] ss:$16 sps:$4 sm:$0xff]   ;;  %v3387_v55 = vld [vmem:[#allocation2 + $0x164] ss:$16 sps:$4 sm:$0xff]   ;;  %v3390_v56 = vld [vmem:[#allocation2 + $0x16c] ss:$16 sps:$4 sm:$0xff]  }
  0x55   : > { %1294 = vmatprep.subr.bf16.mxu0 %v3339_v23  ;;  %1376 = vmatprep.subr.bf16.mxu1 %v3342_v24  ;;  %v3385_v57 = vld [vmem:[#allocation2 + $0x160] ss:$16 sps:$4 sm:$0xff]   ;;  %v3388_v58 = vld [vmem:[#allocation2 + $0x168] ss:$16 sps:$4 sm:$0xff]   ;;  %v3393_v59 = vld [vmem:[#allocation2 + $0x184] ss:$16 sps:$4 sm:$0xff]  }
  0x56   : > { %v3396_v60 = vld [vmem:[#allocation2 + $0x18c] ss:$16 sps:$4 sm:$0xff]   ;;  %v3391_v61 = vld [vmem:[#allocation2 + $0x180] ss:$16 sps:$4 sm:$0xff]   ;;  %v3394_v62 = vld [vmem:[#allocation2 + $0x188] ss:$16 sps:$4 sm:$0xff]  }
  0x57   : > { %v3399_v63 = vld [vmem:[#allocation2 + $0x1a4] ss:$16 sps:$4 sm:$0xff]   ;;  %v3402_v0 = vld [vmem:[#allocation2 + $0x1ac] ss:$16 sps:$4 sm:$0xff]   ;;  %v3397_v1 = vld [vmem:[#allocation2 + $0x1a0] ss:$16 sps:$4 sm:$0xff]  }
  0x58   : > { %1295 = vmatpush1.bf16.msra.mxu0 %v3337_v25  ;;  %1377 = vmatpush1.bf16.msra.mxu1 %v3340_v26  ;;  %v3400_v2 = vld [vmem:[#allocation2 + $0x1a8] ss:$16 sps:$4 sm:$0xff]   ;;  %v3405_v3 = vld [vmem:[#allocation2 + $0x1c4] ss:$16 sps:$4 sm:$0xff]   ;;  %v3408_v4 = vld [vmem:[#allocation2 + $0x1cc] ss:$16 sps:$4 sm:$0xff]  }
  0x59   : > { %1296 = vmatprep.subr.bf16.mxu0 %v3345_v27  ;;  %1378 = vmatprep.subr.bf16.mxu1 %v3348_v28  ;;  %v3403_v5 = vld [vmem:[#allocation2 + $0x1c0] ss:$16 sps:$4 sm:$0xff]   ;;  %v3406_v6 = vld [vmem:[#allocation2 + $0x1c8] ss:$16 sps:$4 sm:$0xff]   ;;  %v3411_v7 = vld [vmem:[#allocation2 + $0x1e4] ss:$16 sps:$4 sm:$0xff]  }
  0x5a   : > { %v3414_v8 = vld [vmem:[#allocation2 + $0x1ec] ss:$16 sps:$4 sm:$0xff]   ;;  %v3409_v9 = vld [vmem:[#allocation2 + $0x1e0] ss:$16 sps:$4 sm:$0xff]   ;;  %v3412_v10 = vld [vmem:[#allocation2 + $0x1e8] ss:$16 sps:$4 sm:$0xff]  }
  0x5b   : > { %v3417_v11 = vld [vmem:[#allocation2 + $0x204] ss:$16 sps:$4 sm:$0xff]   ;;  %v3420_v12 = vld [vmem:[#allocation2 + $0x20c] ss:$16 sps:$4 sm:$0xff]   ;;  %v3978_v14 = vshrl.u32 %v365_v13, 7 }
  0x5c   : > { %1297 = vmatpush1.bf16.msra.mxu0 %v3343_v29  ;;  %1379 = vmatpush1.bf16.msra.mxu1 %v3346_v30  ;;  %v3986_v16 = vld [vmem:[%s4148_s2] sm:$0xf]  ;;  %v3478_v13 = vld [vmem:[#allocation2 + $0x348] ss:$16 sps:$4 sm:$0xff]  }
  0x5d   : > { %1298 = vmatprep.subr.bf16.mxu0 %v3351_v31  ;;  %1380 = vmatprep.subr.bf16.mxu1 %v3354_v32  ;;  %v3981_v15 = vsub.s32 0, %v3978_v14  ;;  %v3989_v17 = vsub.s32 1, %v3978_v14  ;;  %v3992_v18 = vsub.s32 3, %v3978_v14 }
  0x5f   : > { %v368_v19 = vrot.slane %v3986_v16, %v3981_v15  ;;  %v372_v20 = vrot.slane %v3986_v16, %v3989_v17  ;;  %v380_v21 = vrot.slane %v3986_v16, %v3992_v18 }
  0x60   : > { %1299 = vmatpush1.bf16.msra.mxu0 %v3349_v33  ;;  %1381 = vmatpush1.bf16.msra.mxu1 %v3352_v34  ;;  %v3415_v33 = vld [vmem:[#allocation2 + $0x200] ss:$16 sps:$4 sm:$0xff]   ;;  %v3418_v34 = vld [vmem:[#allocation2 + $0x208] ss:$16 sps:$4 sm:$0xff]  }
  0x61   : > { %1300 = vmatprep.subr.bf16.mxu0 %v3357_v35  ;;  %1382 = vmatprep.subr.bf16.mxu1 %v3360_v36 }
  0x64   : > { %1301 = vmatpush1.bf16.msra.mxu0 %v3355_v37  ;;  %1383 = vmatpush1.bf16.msra.mxu1 %v3358_v38  ;;  %v3423_v37 = vld [vmem:[#allocation2 + $0x224] ss:$16 sps:$4 sm:$0xff]   ;;  %v3426_v38 = vld [vmem:[#allocation2 + $0x22c] ss:$16 sps:$4 sm:$0xff]  }
  0x65   : > { %1302 = vmatprep.subr.bf16.mxu0 %v3363_v39  ;;  %1384 = vmatprep.subr.bf16.mxu1 %v3366_v40  ;;  %v3421_v40 = vld [vmem:[#allocation2 + $0x220] ss:$16 sps:$4 sm:$0xff]  }
  0x68   : > { %1303 = vmatpush1.bf16.msra.mxu0 %v3361_v41  ;;  %1385 = vmatpush1.bf16.msra.mxu1 %v3364_v42  ;;  %v3424_v41 = vld [vmem:[#allocation2 + $0x228] ss:$16 sps:$4 sm:$0xff]   ;;  %v3429_v42 = vld [vmem:[#allocation2 + $0x244] ss:$16 sps:$4 sm:$0xff]  }
  0x69   : > { %1304 = vmatprep.subr.bf16.mxu0 %v3369_v43  ;;  %1386 = vmatprep.subr.bf16.mxu1 %v3372_v44  ;;  %v3432_v43 = vld [vmem:[#allocation2 + $0x24c] ss:$16 sps:$4 sm:$0xff]   ;;  %v3427_v44 = vld [vmem:[#allocation2 + $0x240] ss:$16 sps:$4 sm:$0xff]  }
  0x6c   : > { %1305 = vmatpush1.bf16.msra.mxu0 %v3367_v45  ;;  %1387 = vmatpush1.bf16.msra.mxu1 %v3370_v46  ;;  %v3430_v45 = vld [vmem:[#allocation2 + $0x248] ss:$16 sps:$4 sm:$0xff]   ;;  %v3435_v46 = vld [vmem:[#allocation2 + $0x264] ss:$16 sps:$4 sm:$0xff]  }
  0x6d   : > { %1306 = vmatprep.subr.bf16.mxu0 %v3375_v47  ;;  %1388 = vmatprep.subr.bf16.mxu1 %v3378_v48  ;;  %v3438_v47 = vld [vmem:[#allocation2 + $0x26c] ss:$16 sps:$4 sm:$0xff]   ;;  %v3433_v48 = vld [vmem:[#allocation2 + $0x260] ss:$16 sps:$4 sm:$0xff]  }
  0x70   : > { %1307 = vmatpush1.bf16.msra.mxu0 %v3373_v49  ;;  %1389 = vmatpush1.bf16.msra.mxu1 %v3376_v50  ;;  %v3436_v49 = vld [vmem:[#allocation2 + $0x268] ss:$16 sps:$4 sm:$0xff]   ;;  %v3441_v50 = vld [vmem:[#allocation2 + $0x284] ss:$16 sps:$4 sm:$0xff]  }
  0x71   : > { %1308 = vmatprep.subr.bf16.mxu0 %v3381_v51  ;;  %1390 = vmatprep.subr.bf16.mxu1 %v3384_v52  ;;  %v3444_v51 = vld [vmem:[#allocation2 + $0x28c] ss:$16 sps:$4 sm:$0xff]   ;;  %v3439_v52 = vld [vmem:[#allocation2 + $0x280] ss:$16 sps:$4 sm:$0xff]  }
  0x74   : > { %1309 = vmatpush1.bf16.msra.mxu0 %v3379_v53  ;;  %1391 = vmatpush1.bf16.msra.mxu1 %v3382_v54  ;;  %v3442_v53 = vld [vmem:[#allocation2 + $0x288] ss:$16 sps:$4 sm:$0xff]   ;;  %v3447_v54 = vld [vmem:[#allocation2 + $0x2a4] ss:$16 sps:$4 sm:$0xff]  }
  0x75   : > { %1310 = vmatprep.subr.bf16.mxu0 %v3387_v55  ;;  %1392 = vmatprep.subr.bf16.mxu1 %v3390_v56  ;;  %v3450_v55 = vld [vmem:[#allocation2 + $0x2ac] ss:$16 sps:$4 sm:$0xff]   ;;  %v3445_v56 = vld [vmem:[#allocation2 + $0x2a0] ss:$16 sps:$4 sm:$0xff]  }
  0x78   : > { %1311 = vmatpush1.bf16.msra.mxu0 %v3385_v57  ;;  %1393 = vmatpush1.bf16.msra.mxu1 %v3388_v58  ;;  %v3448_v57 = vld [vmem:[#allocation2 + $0x2a8] ss:$16 sps:$4 sm:$0xff]   ;;  %v3453_v58 = vld [vmem:[#allocation2 + $0x2c4] ss:$16 sps:$4 sm:$0xff]  }
  0x79   : > { %1312 = vmatprep.subr.bf16.mxu0 %v3393_v59  ;;  %1394 = vmatprep.subr.bf16.mxu1 %v3396_v60  ;;  %v3456_v59 = vld [vmem:[#allocation2 + $0x2cc] ss:$16 sps:$4 sm:$0xff]   ;;  %v3451_v60 = vld [vmem:[#allocation2 + $0x2c0] ss:$16 sps:$4 sm:$0xff]  }
  0x7c   : > { %1313 = vmatpush1.bf16.msra.mxu0 %v3391_v61  ;;  %1395 = vmatpush1.bf16.msra.mxu1 %v3394_v62  ;;  %v3454_v61 = vld [vmem:[#allocation2 + $0x2c8] ss:$16 sps:$4 sm:$0xff]   ;;  %v3459_v62 = vld [vmem:[#allocation2 + $0x2e4] ss:$16 sps:$4 sm:$0xff]  }
  0x7d   : > { %1314 = vmatprep.subr.bf16.mxu0 %v3399_v63  ;;  %1396 = vmatprep.subr.bf16.mxu1 %v3402_v0  ;;  %v3462_v63 = vld [vmem:[#allocation2 + $0x2ec] ss:$16 sps:$4 sm:$0xff]   ;;  %v3457_v0 = vld [vmem:[#allocation2 + $0x2e0] ss:$16 sps:$4 sm:$0xff]  }
  0x80   : > { %1315 = vmatpush1.bf16.msra.mxu0 %v3397_v1  ;;  %1397 = vmatpush1.bf16.msra.mxu1 %v3400_v2  ;;  %v3460_v1 = vld [vmem:[#allocation2 + $0x2e8] ss:$16 sps:$4 sm:$0xff]   ;;  %v3465_v2 = vld [vmem:[#allocation2 + $0x304] ss:$16 sps:$4 sm:$0xff]  }
  0x81   : > { %1316 = vmatprep.subr.bf16.mxu0 %v3405_v3  ;;  %1398 = vmatprep.subr.bf16.mxu1 %v3408_v4  ;;  %v3468_v3 = vld [vmem:[#allocation2 + $0x30c] ss:$16 sps:$4 sm:$0xff]   ;;  %v3463_v4 = vld [vmem:[#allocation2 + $0x300] ss:$16 sps:$4 sm:$0xff]  }
  0x84   : > { %1317 = vmatpush1.bf16.msra.mxu0 %v3403_v5  ;;  %1399 = vmatpush1.bf16.msra.mxu1 %v3406_v6  ;;  %v3466_v5 = vld [vmem:[#allocation2 + $0x308] ss:$16 sps:$4 sm:$0xff]   ;;  %v3471_v6 = vld [vmem:[#allocation2 + $0x324] ss:$16 sps:$4 sm:$0xff]  }
  0x85   : > { %1318 = vmatprep.subr.bf16.mxu0 %v3411_v7  ;;  %1400 = vmatprep.subr.bf16.mxu1 %v3414_v8  ;;  %v3474_v7 = vld [vmem:[#allocation2 + $0x32c] ss:$16 sps:$4 sm:$0xff]   ;;  %v3469_v8 = vld [vmem:[#allocation2 + $0x320] ss:$16 sps:$4 sm:$0xff]  }
  0x88   : > { %1319 = vmatpush1.bf16.msra.mxu0 %v3409_v9  ;;  %1401 = vmatpush1.bf16.msra.mxu1 %v3412_v10  ;;  %v3472_v9 = vld [vmem:[#allocation2 + $0x328] ss:$16 sps:$4 sm:$0xff]   ;;  %v3477_v10 = vld [vmem:[#allocation2 + $0x344] ss:$16 sps:$4 sm:$0xff]  }
  0x89   : > { %1329 = vmatprep.subr.bf16.mxu0 %v3417_v11  ;;  %1411 = vmatprep.subr.bf16.mxu1 %v3420_v12  ;;  %v3480_v11 = vld [vmem:[#allocation2 + $0x34c] ss:$16 sps:$4 sm:$0xff]   ;;  %v3475_v12 = vld [vmem:[#allocation2 + $0x340] ss:$16 sps:$4 sm:$0xff]  }
 0x11e   : > { %v446_v22 = vpop.f32.mrb[0].mxu0  ;;  %v4000_v25 = vpop.f32.mrb[0].mxu1 }
 0x11f   : > { %v447_v23 = vadd.f32 %v446_v22, %v368_v19  ;;  %v448_v24 = vpop.f32.mrb[1].mxu0  ;;  %v489_v28 = vpop.f32.mrb[1].mxu1  ;;  %v3483_v19 = vld [vmem:[#allocation2 + $0x364] ss:$16 sps:$4 sm:$0xff]   ;;  %v3484_v22 = vld [vmem:[#allocation2 + $0x368] ss:$16 sps:$4 sm:$0xff]  }
 0x120   : > { %v449_v26 = vadd.f32 %v448_v24, %v372_v20  ;;  %v450_v27 = vpop.f32.mrb[2].mxu0  ;;  %v490_v30 = vadd.f32 %v489_v28, %v380_v21  ;;  %v491_v31 = vpop.f32.mrb[2].mxu1  ;;  %v3486_v20 = vld [vmem:[#allocation2 + $0x36c] ss:$16 sps:$4 sm:$0xff]   ;;  %v3481_v21 = vld [vmem:[#allocation2 + $0x360] ss:$16 sps:$4 sm:$0xff]  }
 0x121   : > { %v451_v29 = vpop.f32.mrb[3].mxu0  ;;  %v492_v35 = vpop.f32.mrb[3].mxu1  ;;  %v494_v36 = vpack.c.bf16 %v447_v23, %v447_v23  ;;  %v3489_v23 = vld [vmem:[#allocation2 + $0x384] ss:$16 sps:$4 sm:$0xff]   ;;  %v3492_v24 = vld [vmem:[#allocation2 + $0x38c] ss:$16 sps:$4 sm:$0xff]  }
 0x122   : > { %v495_v32 = vpack.c.bf16 %v449_v26, %v449_v26  ;;  %v497_v39 = vpack.c.bf16 %v490_v30, %v490_v30  ;;  %v3487_v26 = vld [vmem:[#allocation2 + $0x380] ss:$16 sps:$4 sm:$0xff]   ;;  %v3490_v27 = vld [vmem:[#allocation2 + $0x388] ss:$16 sps:$4 sm:$0xff]   ;;  %v3495_v28 = vld [vmem:[#allocation2 + $0x3a4] ss:$16 sps:$4 sm:$0xff]  }
 0x123   : > { %v3498_v29 = vld [vmem:[#allocation2 + $0x3ac] ss:$16 sps:$4 sm:$0xff]   ;;  %v3493_v30 = vld [vmem:[#allocation2 + $0x3a0] ss:$16 sps:$4 sm:$0xff]   ;;  %v3496_v31 = vld [vmem:[#allocation2 + $0x3a8] ss:$16 sps:$4 sm:$0xff]  }
 0x124   : > { %1320 = vmatprep.mubr.bf16.mxu0 %v495_v32  ;;  %1402 = vmatprep.mubr.bf16.mxu1 %v495_v32  ;;  %v4003_v32 = vsub.s32 2, %v3978_v14  ;;  %v3499_v35 = vld [vmem:[#allocation2 + $0x3c0] ss:$16 sps:$4 sm:$0xff]  }
 0x125   : > { %1321 = vmatmul.mubr.bf16.vlgmr.msra.gmra.mrb[4].mxu0 %v494_v36  ;;  %1403 = vmatmul.mubr.bf16.vlgmr.msra.gmra.mrb[4].mxu1 %v494_v36  ;;  %v3502_v36 = vld [vmem:[#allocation2 + $0x3c8] ss:$16 sps:$4 sm:$0xff]  }
 0x126   : > { %1330 = vmatpush1.bf16.msra.mxu0 %v3415_v33  ;;  %1412 = vmatpush1.bf16.msra.mxu1 %v3418_v34  ;;  %v3501_v33 = vld [vmem:[#allocation2 + $0x3c4] ss:$16 sps:$4 sm:$0xff]   ;;  %v3504_v34 = vld [vmem:[#allocation2 + $0x3cc] ss:$16 sps:$4 sm:$0xff]  }
 0x127   : > { %1331 = vmatprep.subr.bf16.mxu0 %v3423_v37  ;;  %1413 = vmatprep.subr.bf16.mxu1 %v3426_v38  ;;  %v376_v37 = vrot.slane %v3986_v16, %v4003_v32  ;;  %v3507_v38 = vld [vmem:[#allocation2 + $0x3e4] ss:$16 sps:$4 sm:$0xff]  }
 0x128   : > { %1361 = vmatprep.mubr.bf16.mxu0 %v497_v39  ;;  %1443 = vmatprep.mubr.bf16.mxu1 %v497_v39  ;;  %v3510_v39 = vld [vmem:[#allocation2 + $0x3ec] ss:$16 sps:$4 sm:$0xff]   ;;  %v3519_v16 = vld [vmem:[#allocation4 + $0x24] ss:$16 sps:$4 sm:$0xff]  }
 0x129   : > { %v488_v14 = vadd.f32 %v4000_v25, %v376_v37  ;;  %v3525_v25 = vld [vmem:[#allocation4 + $0x44] ss:$16 sps:$4 sm:$0xff]   ;;  %v3594_v37 = vld [vmem:[#allocation4 + $0x1ac] ss:$16 sps:$4 sm:$0xff]  }
 0x12a   : > { %1332 = vmatpush1.bf16.msra.mxu0 %v3421_v40  ;;  %1414 = vmatpush1.bf16.msra.mxu1 %v3424_v41  ;;  %v3505_v40 = vld [vmem:[#allocation2 + $0x3e0] ss:$16 sps:$4 sm:$0xff]   ;;  %v3508_v41 = vld [vmem:[#allocation2 + $0x3e8] ss:$16 sps:$4 sm:$0xff]  }
 0x12b   : > { %1333 = vmatprep.subr.bf16.mxu0 %v3429_v42  ;;  %1415 = vmatprep.subr.bf16.mxu1 %v3432_v43  ;;  %v3513_v42 = vld [vmem:[#allocation4 + $0x4] ss:$16 sps:$4 sm:$0xff]   ;;  %v3516_v43 = vld [vmem:[#allocation4 + $0xc] ss:$16 sps:$4 sm:$0xff]  }
 0x12e   : > { %1334 = vmatpush1.bf16.msra.mxu0 %v3427_v44  ;;  %1416 = vmatpush1.bf16.msra.mxu1 %v3430_v45  ;;  %v3511_v44 = vld [vmem:[#allocation4] ss:$16 sps:$4 sm:$0xff]   ;;  %v3514_v45 = vld [vmem:[#allocation4 + $0x8] ss:$16 sps:$4 sm:$0xff]  }
 0x12f   : > { %1335 = vmatprep.subr.bf16.mxu0 %v3435_v46  ;;  %1417 = vmatprep.subr.bf16.mxu1 %v3438_v47  ;;  %v496_v46 = vpack.c.bf16 %v488_v14, %v488_v14  ;;  %v3522_v47 = vld [vmem:[#allocation4 + $0x2c] ss:$16 sps:$4 sm:$0xff]   ;;  %v3595_v14 = vld [vmem:[#allocation4 + $0x1c0] ss:$16 sps:$4 sm:$0xff]  }
 0x132   : > { %1336 = vmatpush1.bf16.msra.mxu0 %v3433_v48  ;;  %1418 = vmatpush1.bf16.msra.mxu1 %v3436_v49  ;;  %v3517_v48 = vld [vmem:[#allocation4 + $0x20] ss:$16 sps:$4 sm:$0xff]   ;;  %v3520_v49 = vld [vmem:[#allocation4 + $0x28] ss:$16 sps:$4 sm:$0xff]  }
 0x133   : > { %1337 = vmatprep.subr.bf16.mxu0 %v3441_v50  ;;  %1419 = vmatprep.subr.bf16.mxu1 %v3444_v51  ;;  %v3528_v50 = vld [vmem:[#allocation4 + $0x4c] ss:$16 sps:$4 sm:$0xff]   ;;  %v3523_v51 = vld [vmem:[#allocation4 + $0x40] ss:$16 sps:$4 sm:$0xff]  }
 0x136   : > { %1338 = vmatpush1.bf16.msra.mxu0 %v3439_v52  ;;  %1420 = vmatpush1.bf16.msra.mxu1 %v3442_v53  ;;  %v3526_v52 = vld [vmem:[#allocation4 + $0x48] ss:$16 sps:$4 sm:$0xff]   ;;  %v3531_v53 = vld [vmem:[#allocation4 + $0x64] ss:$16 sps:$4 sm:$0xff]  }
 0x137   : > { %1339 = vmatprep.subr.bf16.mxu0 %v3447_v54  ;;  %1421 = vmatprep.subr.bf16.mxu1 %v3450_v55  ;;  %v3534_v54 = vld [vmem:[#allocation4 + $0x6c] ss:$16 sps:$4 sm:$0xff]   ;;  %v3529_v55 = vld [vmem:[#allocation4 + $0x60] ss:$16 sps:$4 sm:$0xff]  }
 0x13a   : > { %1340 = vmatpush1.bf16.msra.mxu0 %v3445_v56  ;;  %1422 = vmatpush1.bf16.msra.mxu1 %v3448_v57  ;;  %v3532_v56 = vld [vmem:[#allocation4 + $0x68] ss:$16 sps:$4 sm:$0xff]   ;;  %v3537_v57 = vld [vmem:[#allocation4 + $0x84] ss:$16 sps:$4 sm:$0xff]  }
 0x13b   : > { %1341 = vmatprep.subr.bf16.mxu0 %v3453_v58  ;;  %1423 = vmatprep.subr.bf16.mxu1 %v3456_v59  ;;  %v3540_v58 = vld [vmem:[#allocation4 + $0x8c] ss:$16 sps:$4 sm:$0xff]   ;;  %v3535_v59 = vld [vmem:[#allocation4 + $0x80] ss:$16 sps:$4 sm:$0xff]  }
 0x13e   : > { %1342 = vmatpush1.bf16.msra.mxu0 %v3451_v60  ;;  %1424 = vmatpush1.bf16.msra.mxu1 %v3454_v61  ;;  %v3538_v60 = vld [vmem:[#allocation4 + $0x88] ss:$16 sps:$4 sm:$0xff]   ;;  %v3543_v61 = vld [vmem:[#allocation4 + $0xa4] ss:$16 sps:$4 sm:$0xff]  }
 0x13f   : > { %1343 = vmatprep.subr.bf16.mxu0 %v3459_v62  ;;  %1425 = vmatprep.subr.bf16.mxu1 %v3462_v63  ;;  %v3546_v62 = vld [vmem:[#allocation4 + $0xac] ss:$16 sps:$4 sm:$0xff]   ;;  %v3541_v63 = vld [vmem:[#allocation4 + $0xa0] ss:$16 sps:$4 sm:$0xff]  }
 0x142   : > { %1344 = vmatpush1.bf16.msra.mxu0 %v3457_v0  ;;  %1426 = vmatpush1.bf16.msra.mxu1 %v3460_v1  ;;  %v3544_v0 = vld [vmem:[#allocation4 + $0xa8] ss:$16 sps:$4 sm:$0xff]   ;;  %v3549_v1 = vld [vmem:[#allocation4 + $0xc4] ss:$16 sps:$4 sm:$0xff]  }
 0x143   : > { %1345 = vmatprep.subr.bf16.mxu0 %v3465_v2  ;;  %1427 = vmatprep.subr.bf16.mxu1 %v3468_v3  ;;  %v3552_v2 = vld [vmem:[#allocation4 + $0xcc] ss:$16 sps:$4 sm:$0xff]   ;;  %v3547_v3 = vld [vmem:[#allocation4 + $0xc0] ss:$16 sps:$4 sm:$0xff]  }
 0x146   : > { %1346 = vmatpush1.bf16.msra.mxu0 %v3463_v4  ;;  %1428 = vmatpush1.bf16.msra.mxu1 %v3466_v5  ;;  %v3550_v4 = vld [vmem:[#allocation4 + $0xc8] ss:$16 sps:$4 sm:$0xff]   ;;  %v3555_v5 = vld [vmem:[#allocation4 + $0xe4] ss:$16 sps:$4 sm:$0xff]  }
 0x147   : > { %1347 = vmatprep.subr.bf16.mxu0 %v3471_v6  ;;  %1429 = vmatprep.subr.bf16.mxu1 %v3474_v7  ;;  %v3558_v6 = vld [vmem:[#allocation4 + $0xec] ss:$16 sps:$4 sm:$0xff]   ;;  %v3553_v7 = vld [vmem:[#allocation4 + $0xe0] ss:$16 sps:$4 sm:$0xff]  }
 0x14a   : > { %1348 = vmatpush1.bf16.msra.mxu0 %v3469_v8  ;;  %1430 = vmatpush1.bf16.msra.mxu1 %v3472_v9  ;;  %v3556_v8 = vld [vmem:[#allocation4 + $0xe8] ss:$16 sps:$4 sm:$0xff]   ;;  %v3561_v9 = vld [vmem:[#allocation4 + $0x104] ss:$16 sps:$4 sm:$0xff]  }
 0x14b   : > { %1349 = vmatprep.subr.bf16.mxu0 %v3477_v10  ;;  %1431 = vmatprep.subr.bf16.mxu1 %v3480_v11  ;;  %v3564_v10 = vld [vmem:[#allocation4 + $0x10c] ss:$16 sps:$4 sm:$0xff]   ;;  %v3559_v11 = vld [vmem:[#allocation4 + $0x100] ss:$16 sps:$4 sm:$0xff]  }
 0x14e   : > { %1350 = vmatpush1.bf16.msra.mxu0 %v3475_v12  ;;  %1432 = vmatpush1.bf16.msra.mxu1 %v3478_v13  ;;  %v3562_v12 = vld [vmem:[#allocation4 + $0x108] ss:$16 sps:$4 sm:$0xff]   ;;  %v3567_v13 = vld [vmem:[#allocation4 + $0x124] ss:$16 sps:$4 sm:$0xff]  }
 0x14f   : > { %1351 = vmatprep.subr.bf16.mxu0 %v3483_v19  ;;  %1433 = vmatprep.subr.bf16.mxu1 %v3486_v20  ;;  %v3570_v19 = vld [vmem:[#allocation4 + $0x12c] ss:$16 sps:$4 sm:$0xff]   ;;  %v3565_v20 = vld [vmem:[#allocation4 + $0x120] ss:$16 sps:$4 sm:$0xff]  }
 0x152   : > { %1352 = vmatpush1.bf16.msra.mxu0 %v3481_v21  ;;  %1434 = vmatpush1.bf16.msra.mxu1 %v3484_v22  ;;  %v3568_v21 = vld [vmem:[#allocation4 + $0x128] ss:$16 sps:$4 sm:$0xff]   ;;  %v3573_v22 = vld [vmem:[#allocation4 + $0x144] ss:$16 sps:$4 sm:$0xff]  }
 0x153   : > { %1353 = vmatprep.subr.bf16.mxu0 %v3489_v23  ;;  %1435 = vmatprep.subr.bf16.mxu1 %v3492_v24  ;;  %v3576_v23 = vld [vmem:[#allocation4 + $0x14c] ss:$16 sps:$4 sm:$0xff]   ;;  %v3571_v24 = vld [vmem:[#allocation4 + $0x140] ss:$16 sps:$4 sm:$0xff]  }
 0x156   : > { %1354 = vmatpush1.bf16.msra.mxu0 %v3487_v26  ;;  %1436 = vmatpush1.bf16.msra.mxu1 %v3490_v27  ;;  %v3574_v26 = vld [vmem:[#allocation4 + $0x148] ss:$16 sps:$4 sm:$0xff]   ;;  %v3579_v27 = vld [vmem:[#allocation4 + $0x164] ss:$16 sps:$4 sm:$0xff]  }
 0x157   : > { %1355 = vmatprep.subr.bf16.mxu0 %v3495_v28  ;;  %1437 = vmatprep.subr.bf16.mxu1 %v3498_v29  ;;  %v3582_v28 = vld [vmem:[#allocation4 + $0x16c] ss:$16 sps:$4 sm:$0xff]   ;;  %v3577_v29 = vld [vmem:[#allocation4 + $0x160] ss:$16 sps:$4 sm:$0xff]  }
 0x15a   : > { %1356 = vmatpush1.bf16.msra.mxu0 %v3493_v30  ;;  %1438 = vmatpush1.bf16.msra.mxu1 %v3496_v31  ;;  %v3580_v30 = vld [vmem:[#allocation4 + $0x168] ss:$16 sps:$4 sm:$0xff]   ;;  %v3583_v31 = vld [vmem:[#allocation4 + $0x180] ss:$16 sps:$4 sm:$0xff]  }
 0x15b   : > { %1357 = vmatprep.subr.bf16.mxu0 %v3501_v33  ;;  %1439 = vmatprep.subr.bf16.mxu1 %v3504_v34  ;;  %v3585_v33 = vld [vmem:[#allocation4 + $0x184] ss:$16 sps:$4 sm:$0xff]   ;;  %v3586_v34 = vld [vmem:[#allocation4 + $0x188] ss:$16 sps:$4 sm:$0xff]  }
 0x15e   : > { %1358 = vmatpush1.bf16.msra.mxu0 %v3499_v35  ;;  %1440 = vmatpush1.bf16.msra.mxu1 %v3502_v36  ;;  %v3588_v35 = vld [vmem:[#allocation4 + $0x18c] ss:$16 sps:$4 sm:$0xff]   ;;  %v3591_v36 = vld [vmem:[#allocation4 + $0x1a4] ss:$16 sps:$4 sm:$0xff]  }
 0x15f   : > { %1359 = vmatprep.subr.bf16.mxu0 %v3507_v38  ;;  %1441 = vmatprep.subr.bf16.mxu1 %v3510_v39  ;;  %v3589_v38 = vld [vmem:[#allocation4 + $0x1a0] ss:$16 sps:$4 sm:$0xff]   ;;  %v3592_v39 = vld [vmem:[#allocation4 + $0x1a8] ss:$16 sps:$4 sm:$0xff]  }
 0x162   : > { %1360 = vmatpush1.bf16.msra.mxu0 %v3505_v40  ;;  %1442 = vmatpush1.bf16.msra.mxu1 %v3508_v41  ;;  %v3597_v40 = vld [vmem:[#allocation4 + $0x1c4] ss:$16 sps:$4 sm:$0xff]   ;;  %v3600_v41 = vld [vmem:[#allocation4 + $0x1cc] ss:$16 sps:$4 sm:$0xff]  }
 0x163   : > { %2282 = vmatprep.subr.bf16.mxu0 %v3513_v42  ;;  %2364 = vmatprep.subr.bf16.mxu1 %v3516_v43  ;;  %v3598_v42 = vld [vmem:[#allocation4 + $0x1c8] ss:$16 sps:$4 sm:$0xff]   ;;  %v3603_v43 = vld [vmem:[#allocation4 + $0x1e4] ss:$16 sps:$4 sm:$0xff]  }
 0x165   : > { %1362 = vmatmul.mubr.bf16.vlgmr.msra.gmra.mrb[4].mxu0 %v496_v46  ;;  %1444 = vmatmul.mubr.bf16.vlgmr.msra.gmra.mrb[4].mxu1 %v496_v46  ;;  %v3604_v46 = vld [vmem:[#allocation4 + $0x1e8] ss:$16 sps:$4 sm:$0xff]  }
 0x166   : > { %2283 = vmatpush1.bf16.msra.mxu0 %v3511_v44  ;;  %2365 = vmatpush1.bf16.msra.mxu1 %v3514_v45  ;;  %v3606_v44 = vld [vmem:[#allocation4 + $0x1ec] ss:$16 sps:$4 sm:$0xff]   ;;  %v3601_v45 = vld [vmem:[#allocation4 + $0x1e0] ss:$16 sps:$4 sm:$0xff]  }
 0x167   : > { %2284 = vmatprep.subr.bf16.mxu0 %v3519_v16  ;;  %2366 = vmatprep.subr.bf16.mxu1 %v3522_v47  ;;  %v3609_v16 = vld [vmem:[#allocation4 + $0x204] ss:$16 sps:$4 sm:$0xff]   ;;  %v3612_v47 = vld [vmem:[#allocation4 + $0x20c] ss:$16 sps:$4 sm:$0xff]  }
 0x16a   : > { %2285 = vmatpush1.bf16.msra.mxu0 %v3517_v48  ;;  %2367 = vmatpush1.bf16.msra.mxu1 %v3520_v49  ;;  %v4011_v48 = vld [vmem:[%s4150_s4] sm:$0xf] }
 0x16b   : > { %2286 = vmatprep.subr.bf16.mxu0 %v3525_v25  ;;  %2368 = vmatprep.subr.bf16.mxu1 %v3528_v50  ;;  %v631_v49 = vrot.slane %v4011_v48, %v3981_v15  ;;  %v635_v25 = vrot.slane %v4011_v48, %v3989_v17  ;;  %v643_v50 = vrot.slane %v4011_v48, %v3992_v18 }
 0x16e   : > { %2287 = vmatpush1.bf16.msra.mxu0 %v3523_v51  ;;  %2369 = vmatpush1.bf16.msra.mxu1 %v3526_v52 }
 0x16f   : > { %2288 = vmatprep.subr.bf16.mxu0 %v3531_v53  ;;  %2370 = vmatprep.subr.bf16.mxu1 %v3534_v54 }
 0x172   : > { %2289 = vmatpush1.bf16.msra.mxu0 %v3529_v55  ;;  %2371 = vmatpush1.bf16.msra.mxu1 %v3532_v56 }
 0x173   : > { %2290 = vmatprep.subr.bf16.mxu0 %v3537_v57  ;;  %2372 = vmatprep.subr.bf16.mxu1 %v3540_v58 }
 0x176   : > { %2291 = vmatpush1.bf16.msra.mxu0 %v3535_v59  ;;  %2373 = vmatpush1.bf16.msra.mxu1 %v3538_v60 }
 0x177   : > { %2292 = vmatprep.subr.bf16.mxu0 %v3543_v61  ;;  %2374 = vmatprep.subr.bf16.mxu1 %v3546_v62 }
 0x17a   : > { %2293 = vmatpush1.bf16.msra.mxu0 %v3541_v63  ;;  %2375 = vmatpush1.bf16.msra.mxu1 %v3544_v0 }
 0x17b   : > { %2294 = vmatprep.subr.bf16.mxu0 %v3549_v1  ;;  %2376 = vmatprep.subr.bf16.mxu1 %v3552_v2 }
 0x17e   : > { %2295 = vmatpush1.bf16.msra.mxu0 %v3547_v3  ;;  %2377 = vmatpush1.bf16.msra.mxu1 %v3550_v4 }
 0x17f   : > { %2296 = vmatprep.subr.bf16.mxu0 %v3555_v5  ;;  %2378 = vmatprep.subr.bf16.mxu1 %v3558_v6 }
 0x182   : > { %2297 = vmatpush1.bf16.msra.mxu0 %v3553_v7  ;;  %2379 = vmatpush1.bf16.msra.mxu1 %v3556_v8 }
 0x183   : > { %2298 = vmatprep.subr.bf16.mxu0 %v3561_v9  ;;  %2380 = vmatprep.subr.bf16.mxu1 %v3564_v10 }
 0x186   : > { %2299 = vmatpush1.bf16.msra.mxu0 %v3559_v11  ;;  %2381 = vmatpush1.bf16.msra.mxu1 %v3562_v12 }
 0x187   : > { %2300 = vmatprep.subr.bf16.mxu0 %v3567_v13  ;;  %2382 = vmatprep.subr.bf16.mxu1 %v3570_v19 }
 0x18a   : > { %2301 = vmatpush1.bf16.msra.mxu0 %v3565_v20  ;;  %2383 = vmatpush1.bf16.msra.mxu1 %v3568_v21 }
 0x18b   : > { %2302 = vmatprep.subr.bf16.mxu0 %v3573_v22  ;;  %2384 = vmatprep.subr.bf16.mxu1 %v3576_v23 }
 0x18e   : > { %2303 = vmatpush1.bf16.msra.mxu0 %v3571_v24  ;;  %2385 = vmatpush1.bf16.msra.mxu1 %v3574_v26 }
 0x18f   : > { %2304 = vmatprep.subr.bf16.mxu0 %v3579_v27  ;;  %2386 = vmatprep.subr.bf16.mxu1 %v3582_v28 }
 0x192   : > { %2305 = vmatpush1.bf16.msra.mxu0 %v3577_v29  ;;  %2387 = vmatpush1.bf16.msra.mxu1 %v3580_v30 }
 0x193   : > { %2306 = vmatprep.subr.bf16.mxu0 %v3585_v33  ;;  %2388 = vmatprep.subr.bf16.mxu1 %v3588_v35  ;;  %v3607_v33 = vld [vmem:[#allocation4 + $0x200] ss:$16 sps:$4 sm:$0xff]  }
 0x196   : > { %2307 = vmatpush1.bf16.msra.mxu0 %v3583_v31  ;;  %2389 = vmatpush1.bf16.msra.mxu1 %v3586_v34  ;;  %v3610_v34 = vld [vmem:[#allocation4 + $0x208] ss:$16 sps:$4 sm:$0xff]  }
 0x197   : > { %2308 = vmatprep.subr.bf16.mxu0 %v3591_v36  ;;  %2390 = vmatprep.subr.bf16.mxu1 %v3594_v37  ;;  %v3615_v36 = vld [vmem:[#allocation4 + $0x224] ss:$16 sps:$4 sm:$0xff]   ;;  %v3618_v37 = vld [vmem:[#allocation4 + $0x22c] ss:$16 sps:$4 sm:$0xff]  }
 0x19a   : > { %2309 = vmatpush1.bf16.msra.mxu0 %v3589_v38  ;;  %2391 = vmatpush1.bf16.msra.mxu1 %v3592_v39  ;;  %v3613_v39 = vld [vmem:[#allocation4 + $0x220] ss:$16 sps:$4 sm:$0xff]  }
 0x19b   : > { %2310 = vmatprep.subr.bf16.mxu0 %v3597_v40  ;;  %2392 = vmatprep.subr.bf16.mxu1 %v3600_v41  ;;  %v3616_v40 = vld [vmem:[#allocation4 + $0x228] ss:$16 sps:$4 sm:$0xff]   ;;  %v3621_v41 = vld [vmem:[#allocation4 + $0x244] ss:$16 sps:$4 sm:$0xff]  }
 0x19e   : > { %2311 = vmatpush1.bf16.msra.mxu0 %v3595_v14  ;;  %2393 = vmatpush1.bf16.msra.mxu1 %v3598_v42  ;;  %v3624_v14 = vld [vmem:[#allocation4 + $0x24c] ss:$16 sps:$4 sm:$0xff]   ;;  %v3619_v42 = vld [vmem:[#allocation4 + $0x240] ss:$16 sps:$4 sm:$0xff]  }
 0x19f   : > { %2312 = vmatprep.subr.bf16.mxu0 %v3603_v43  ;;  %2394 = vmatprep.subr.bf16.mxu1 %v3606_v44  ;;  %v3622_v43 = vld [vmem:[#allocation4 + $0x248] ss:$16 sps:$4 sm:$0xff]   ;;  %v3627_v44 = vld [vmem:[#allocation4 + $0x264] ss:$16 sps:$4 sm:$0xff]  }
 0x1a2   : > { %2313 = vmatpush1.bf16.msra.mxu0 %v3601_v45  ;;  %2395 = vmatpush1.bf16.msra.mxu1 %v3604_v46  ;;  %v3630_v45 = vld [vmem:[#allocation4 + $0x26c] ss:$16 sps:$4 sm:$0xff]   ;;  %v3625_v46 = vld [vmem:[#allocation4 + $0x260] ss:$16 sps:$4 sm:$0xff]  }
 0x1a3   : > { %2323 = vmatprep.subr.bf16.mxu0 %v3609_v16  ;;  %2405 = vmatprep.subr.bf16.mxu1 %v3612_v47  ;;  %v3628_v16 = vld [vmem:[#allocation4 + $0x268] ss:$16 sps:$4 sm:$0xff]   ;;  %v3633_v47 = vld [vmem:[#allocation4 + $0x284] ss:$16 sps:$4 sm:$0xff]  }
 0x238   : > { %v1363_v51 = vpop.f32.mrb[4].mxu0  ;;  %v4019_v52 = vpop.f32.mrb[4].mxu1 }
 0x239   : > { %v3259_v53 = vadd.f32 %v1363_v51, %v631_v49  ;;  %v1365_v54 = vpop.f32.mrb[5].mxu0  ;;  %v1447_v55 = vpop.f32.mrb[5].mxu1  ;;  %v3636_v49 = vld [vmem:[#allocation4 + $0x28c] ss:$16 sps:$4 sm:$0xff]   ;;  %v3634_v51 = vld [vmem:[#allocation4 + $0x288] ss:$16 sps:$4 sm:$0xff]  }
 0x23a   : > { %v3260_v56 = vadd.f32 %v1365_v54, %v635_v25  ;;  %v3262_v57 = vadd.f32 %v1447_v55, %v643_v50  ;;  %v1367_v58 = vpop.f32.mrb[6].mxu0  ;;  %v1449_v59 = vpop.f32.mrb[6].mxu1  ;;  %v639_v25 = vrot.slane %v4011_v48, %v4003_v32  ;;  %v3631_v50 = vld [vmem:[#allocation4 + $0x280] ss:$16 sps:$4 sm:$0xff]   ;;  %v3642_v54 = vld [vmem:[#allocation4 + $0x2ac] ss:$16 sps:$4 sm:$0xff]  }
 0x23b   : > { %v1456_v60 = vmul.f32 %v3259_v53, %v3259_v53  ;;  %v1368_v61 = vpop.f32.mrb[7].mxu0  ;;  %v1450_v62 = vpop.f32.mrb[7].mxu1  ;;  %v1452_v21 = vmul.f32 0.5, %v3259_v53  ;;  %v3645_v58 = vld [vmem:[#allocation4 + $0x2c4] ss:$16 sps:$4 sm:$0xff]  }
 0x23c   : > { %v1457_v63 = vmul.f32 %v3260_v56, %v3260_v56  ;;  %v1459_v0 = vmul.f32 %v3262_v57, %v3262_v57  ;;  %v1453_v23 = vmul.f32 0.5, %v3260_v56  ;;  %v1455_v27 = vmul.f32 0.5, %v3262_v57  ;;  %v3648_v59 = vld [vmem:[#allocation4 + $0x2cc] ss:$16 sps:$4 sm:$0xff]   ;;  %v3646_v61 = vld [vmem:[#allocation4 + $0x2c8] ss:$16 sps:$4 sm:$0xff]  }
 0x23d   : > { %v1460_v1 = vmul.f32 %v3259_v53, %v1456_v60  ;;  %v4024_v55 = vadd.f32 %v4019_v52, %v639_v25  ;;  %v3643_v60 = vld [vmem:[#allocation4 + $0x2c0] ss:$16 sps:$4 sm:$0xff]   ;;  %v3651_v62 = vld [vmem:[#allocation4 + $0x2e4] ss:$16 sps:$4 sm:$0xff]   ;;  %v3654_v52 = vld [vmem:[#allocation4 + $0x2ec] ss:$16 sps:$4 sm:$0xff]  }
 0x23e   : > { %v1461_v2 = vmul.f32 %v3260_v56, %v1457_v63  ;;  %v1463_v3 = vmul.f32 %v3262_v57, %v1459_v0  ;;  %v3649_v0 = vld [vmem:[#allocation4 + $0x2e0] ss:$16 sps:$4 sm:$0xff]  }
 0x23f   : > { %v1464_v4 = vmul.f32 0.044715, %v1460_v1  ;;  %v1458_v48 = vmul.f32 %v4024_v55, %v4024_v55  ;;  %v3652_v1 = vld [vmem:[#allocation4 + $0x2e8] ss:$16 sps:$4 sm:$0xff]   ;;  %v3705_v25 = vld [vmem:[%s4153_s7] sm:$0xff]  }
 0x240   : > { %v1465_v5 = vmul.f32 0.044715, %v1461_v2  ;;  %v1467_v6 = vmul.f32 0.044715, %v1463_v3  ;;  %v3657_v2 = vld [vmem:[#allocation4 + $0x304] ss:$16 sps:$4 sm:$0xff]  }
 0x241   : > { %v1468_v7 = vadd.f32 %v3259_v53, %v1464_v4  ;;  %v3639_v53 = vld [vmem:[#allocation4 + $0x2a4] ss:$16 sps:$4 sm:$0xff]   ;;  %v1462_v63 = vmul.f32 %v4024_v55, %v1458_v48  ;;  %v3660_v3 = vld [vmem:[#allocation4 + $0x30c] ss:$16 sps:$4 sm:$0xff]  }
 0x242   : > { %v1469_v8 = vadd.f32 %v3260_v56, %v1465_v5  ;;  %v1471_v9 = vadd.f32 %v3262_v57, %v1467_v6  ;;  %v3637_v56 = vld [vmem:[#allocation4 + $0x2a0] ss:$16 sps:$4 sm:$0xff]   ;;  %v3640_v57 = vld [vmem:[#allocation4 + $0x2a8] ss:$16 sps:$4 sm:$0xff]  }
 0x243   : > { %v1472_v10 = vmul.f32 0.7978846, %v1468_v7  ;;  %v1466_v4 = vmul.f32 0.044715, %v1462_v63  ;;  %v3655_v5 = vld [vmem:[#allocation4 + $0x300] ss:$16 sps:$4 sm:$0xff]  }
 0x244   : > { %v1473_v11 = vmul.f32 0.7978846, %v1469_v8  ;;  %v1475_v12 = vmul.f32 0.7978846, %v1471_v9  ;;  %v3658_v6 = vld [vmem:[#allocation4 + $0x308] ss:$16 sps:$4 sm:$0xff]  }
 0x245   : > { %3735 = vtanh.f32 %v1472_v10  ;;  %v3663_v7 = vld [vmem:[#allocation4 + $0x324] ss:$16 sps:$4 sm:$0xff]   ;;  %v3666_v8 = vld [vmem:[#allocation4 + $0x32c] ss:$16 sps:$4 sm:$0xff]   ;;  %v1470_v9 = vadd.f32 %v4024_v55, %v1466_v4  ;;  %v3661_v10 = vld [vmem:[#allocation4 + $0x320] ss:$16 sps:$4 sm:$0xff]  }
 0x246   : > { %3737 = vtanh.f32 %v1473_v11  ;;  %v3664_v11 = vld [vmem:[#allocation4 + $0x328] ss:$16 sps:$4 sm:$0xff]   ;;  %v3720_v63 = vld [vmem:[%s4153_s7 + $0xe0] sm:$0xff]  }
 0x247   : > { %3739 = vtanh.f32 %v1475_v12  ;;  %v3669_v12 = vld [vmem:[#allocation4 + $0x344] ss:$16 sps:$4 sm:$0xff]   ;;  %v3715_v48 = vld [vmem:[%s4153_s7 + $0x58] sm:$0xff]   ;;  %v3725_v4 = vld [vmem:[%s4153_s7 + $0x28] sm:$0xff]  }
 0x24f   : > { %v3736_v13 = vpop.eup %3735 }
 0x250   : > { %v1480_v19 = vadd.f32 1.0, %v3736_v13  ;;  %v3738_v20 = vpop.eup %3737  ;;  %v3672_v13 = vld [vmem:[#allocation4 + $0x34c] ss:$16 sps:$4 sm:$0xff]  }
 0x251   : > { %v3740_v22 = vpop.eup %3739  ;;  %v1481_v24 = vadd.f32 1.0, %v3738_v20  ;;  %v3667_v20 = vld [vmem:[#allocation4 + $0x340] ss:$16 sps:$4 sm:$0xff]  }
 0x252   : > { %v1484_v26 = vmul.f32 %v1480_v19, %v1452_v21  ;;  %v1483_v28 = vadd.f32 1.0, %v3740_v22  ;;  %v1474_v19 = vmul.f32 0.7978846, %v1470_v9  ;;  %v3670_v21 = vld [vmem:[#allocation4 + $0x348] ss:$16 sps:$4 sm:$0xff]   ;;  %v3730_v9 = vld [vmem:[%s4153_s7 + $0xb0] sm:$0xff]  }
 0x253   : > { %v1485_v29 = vmul.f32 %v1481_v24, %v1453_v23  ;;  %v3675_v22 = vld [vmem:[#allocation4 + $0x364] ss:$16 sps:$4 sm:$0xff]   ;;  %v3678_v23 = vld [vmem:[#allocation4 + $0x36c] ss:$16 sps:$4 sm:$0xff]   ;;  %v3673_v24 = vld [vmem:[#allocation4 + $0x360] ss:$16 sps:$4 sm:$0xff]  }
 0x254   : > { %v1487_v30 = vmul.f32 %v1483_v28, %v1455_v27  ;;  %v1488_v35 = vpack.c.bf16 %v1484_v26, %v1484_v26  ;;  %3741 = vtanh.f32 %v1474_v19  ;;  %v3676_v26 = vld [vmem:[#allocation4 + $0x368] ss:$16 sps:$4 sm:$0xff]   ;;  %v3681_v27 = vld [vmem:[#allocation4 + $0x384] ss:$16 sps:$4 sm:$0xff]   ;;  %v3684_v28 = vld [vmem:[#allocation4 + $0x38c] ss:$16 sps:$4 sm:$0xff]  }
 0x255   : > { %v1489_v31 = vpack.c.bf16 %v1485_v29, %v1485_v29  ;;  %v3679_v29 = vld [vmem:[#allocation4 + $0x380] ss:$16 sps:$4 sm:$0xff]  }
 0x256   : > { %v1491_v38 = vpack.c.bf16 %v1487_v30, %v1487_v30  ;;  %v3682_v30 = vld [vmem:[#allocation4 + $0x388] ss:$16 sps:$4 sm:$0xff]   ;;  %v1620_v19 = vld [vmem:[%s4152_s6] sm:$0xf] }
 0x257   : > { %2314 = vmatprep.mubr.bf16.mxu0 %v1489_v31  ;;  %2396 = vmatprep.mubr.bf16.mxu1 %v1489_v31  ;;  %v3687_v31 = vld [vmem:[#allocation4 + $0x3a4] ss:$16 sps:$4 sm:$0xff]  }
 0x258   : > { %2315 = vmatmul.mubr.bf16.vlgmr.msra.gmra.mrb[8].mxu0 %v1488_v35  ;;  %2397 = vmatmul.mubr.bf16.vlgmr.msra.gmra.mrb[8].mxu1 %v1488_v35  ;;  %v3688_v35 = vld [vmem:[#allocation4 + $0x3a8] ss:$16 sps:$4 sm:$0xff]  }
 0x259   : > { %2324 = vmatpush1.bf16.msra.mxu0 %v3607_v33  ;;  %2406 = vmatpush1.bf16.msra.mxu1 %v3610_v34  ;;  %v3690_v33 = vld [vmem:[#allocation4 + $0x3ac] ss:$16 sps:$4 sm:$0xff]   ;;  %v3685_v34 = vld [vmem:[#allocation4 + $0x3a0] ss:$16 sps:$4 sm:$0xff]  }
 0x25a   : > { %2355 = vmatprep.mubr.bf16.mxu0 %v1491_v38  ;;  %2437 = vmatprep.mubr.bf16.mxu1 %v1491_v38 }
 0x25b   : > { %2325 = vmatprep.subr.bf16.mxu0 %v3615_v36  ;;  %2407 = vmatprep.subr.bf16.mxu1 %v3618_v37  ;;  %v3693_v36 = vld [vmem:[#allocation4 + $0x3c4] ss:$16 sps:$4 sm:$0xff]   ;;  %v3696_v37 = vld [vmem:[#allocation4 + $0x3cc] ss:$16 sps:$4 sm:$0xff]  }
 0x25d   : > { %2326 = vmatpush1.bf16.msra.mxu0 %v3613_v39  ;;  %2408 = vmatpush1.bf16.msra.mxu1 %v3616_v40  ;;  %v3691_v39 = vld [vmem:[#allocation4 + $0x3c0] ss:$16 sps:$4 sm:$0xff]   ;;  %v3694_v40 = vld [vmem:[#allocation4 + $0x3c8] ss:$16 sps:$4 sm:$0xff]  }
 0x25e   : > { %2327 = vmatprep.subr.bf16.mxu0 %v3621_v41  ;;  %2409 = vmatprep.subr.bf16.mxu1 %v3624_v14  ;;  %v3742_v38 = vpop.eup %3741  ;;  %v3699_v41 = vld [vmem:[#allocation4 + $0x3e4] ss:$16 sps:$4 sm:$0xff]   ;;  %v3702_v14 = vld [vmem:[#allocation4 + $0x3ec] ss:$16 sps:$4 sm:$0xff]  }
 0x261   : > { %2328 = vmatpush1.bf16.msra.mxu0 %v3619_v42  ;;  %2410 = vmatpush1.bf16.msra.mxu1 %v3622_v43  ;;  %v1482_v42 = vadd.f32 1.0, %v3742_v38  ;;  %v1454_v43 = vmul.f32 0.5, %v4024_v55  ;;  %v3710_v55 = vld [vmem:[%s4153_s7 + $0x88] sm:$0xff]  }
 0x262   : > { %2329 = vmatprep.subr.bf16.mxu0 %v3627_v44  ;;  %2411 = vmatprep.subr.bf16.mxu1 %v3630_v45  ;;  %v3697_v44 = vld [vmem:[#allocation4 + $0x3e0] ss:$16 sps:$4 sm:$0xff]   ;;  %v3700_v45 = vld [vmem:[#allocation4 + $0x3e8] ss:$16 sps:$4 sm:$0xff]  }
 0x265   : > { %2330 = vmatpush1.bf16.msra.mxu0 %v3625_v46  ;;  %2412 = vmatpush1.bf16.msra.mxu1 %v3628_v16  ;;  %v1486_v46 = vmul.f32 %v1482_v42, %v1454_v43 }
 0x266   : > { %2331 = vmatprep.subr.bf16.mxu0 %v3633_v47  ;;  %2413 = vmatprep.subr.bf16.mxu1 %v3636_v49  ;;  %v3703_v47 = vld [vmem:[%s4153_s7 + $0x40] sm:$0xff]  }
 0x267   : > { %v1490_v16 = vpack.c.bf16 %v1486_v46, %v1486_v46  ;;  %v3704_v49 = vld [vmem:[%s4153_s7 + $0xc0] sm:$0xff]  }
 0x269   : > { %2332 = vmatpush1.bf16.msra.mxu0 %v3631_v50  ;;  %2414 = vmatpush1.bf16.msra.mxu1 %v3634_v51  ;;  %v3706_v50 = vld [vmem:[%s4153_s7 + $0x80] sm:$0xff]   ;;  %v3707_v51 = vld [vmem:[%s4153_s7 + $0x48] sm:$0xff]  }
 0x26a   : > { %2333 = vmatprep.subr.bf16.mxu0 %v3639_v53  ;;  %2415 = vmatprep.subr.bf16.mxu1 %v3642_v54  ;;  %v3708_v53 = vld [vmem:[%s4153_s7 + $0xc8] sm:$0xff]  }
 0x26b   : > { %v3709_v54 = vld [vmem:[%s4153_s7 + $0x8] sm:$0xff]  }
 0x26d   : > { %2334 = vmatpush1.bf16.msra.mxu0 %v3637_v56  ;;  %2416 = vmatpush1.bf16.msra.mxu1 %v3640_v57  ;;  %v3711_v56 = vld [vmem:[%s4153_s7 + $0x50] sm:$0xff]  }
 0x26e   : > { %2335 = vmatprep.subr.bf16.mxu0 %v3645_v58  ;;  %2417 = vmatprep.subr.bf16.mxu1 %v3648_v59  ;;  %v3712_v57 = vld [vmem:[%s4153_s7 + $0xd0] sm:$0xff]  }
 0x26f   : > { %v3713_v58 = vld [vmem:[%s4153_s7 + $0x10] sm:$0xff]  }
 0x270   : > { %v3714_v59 = vld [vmem:[%s4153_s7 + $0x90] sm:$0xff]  }
 0x271   : > { %2336 = vmatpush1.bf16.msra.mxu0 %v3643_v60  ;;  %2418 = vmatpush1.bf16.msra.mxu1 %v3646_v61  ;;  %v3716_v60 = vld [vmem:[%s4153_s7 + $0xd8] sm:$0xff]  }
 0x272   : > { %2337 = vmatprep.subr.bf16.mxu0 %v3651_v62  ;;  %2419 = vmatprep.subr.bf16.mxu1 %v3654_v52  ;;  %v3717_v61 = vld [vmem:[%s4153_s7 + $0x18] sm:$0xff]   ;;  %v3719_v52 = vld [vmem:[%s4153_s7 + $0x60] sm:$0xff]  }
 0x273   : > { %v3718_v62 = vld [vmem:[%s4153_s7 + $0x98] sm:$0xff]  }
 0x275   : > { %2338 = vmatpush1.bf16.msra.mxu0 %v3649_v0  ;;  %2420 = vmatpush1.bf16.msra.mxu1 %v3652_v1  ;;  %v3721_v0 = vld [vmem:[%s4153_s7 + $0x20] sm:$0xff]  }
 0x276   : > { %2339 = vmatprep.subr.bf16.mxu0 %v3657_v2  ;;  %2421 = vmatprep.subr.bf16.mxu1 %v3660_v3  ;;  %v3722_v1 = vld [vmem:[%s4153_s7 + $0xa0] sm:$0xff]   ;;  %v3723_v2 = vld [vmem:[%s4153_s7 + $0x68] sm:$0xff]  }
 0x277   : > { %v3724_v3 = vld [vmem:[%s4153_s7 + $0xe8] sm:$0xff]  }
 0x279   : > { %2340 = vmatpush1.bf16.msra.mxu0 %v3655_v5  ;;  %2422 = vmatpush1.bf16.msra.mxu1 %v3658_v6  ;;  %v3726_v5 = vld [vmem:[%s4153_s7 + $0xa8] sm:$0xff]   ;;  %v3727_v6 = vld [vmem:[%s4153_s7 + $0x70] sm:$0xff]  }
 0x27a   : > { %2341 = vmatprep.subr.bf16.mxu0 %v3663_v7  ;;  %2423 = vmatprep.subr.bf16.mxu1 %v3666_v8  ;;  %v3728_v7 = vld [vmem:[%s4153_s7 + $0xf0] sm:$0xff]  }
 0x27b   : > { %v3729_v8 = vld [vmem:[%s4153_s7 + $0x30] sm:$0xff]  }
 0x27d   : > { %2342 = vmatpush1.bf16.msra.mxu0 %v3661_v10  ;;  %2424 = vmatpush1.bf16.msra.mxu1 %v3664_v11  ;;  %v3731_v10 = vld [vmem:[%s4153_s7 + $0x78] sm:$0xff]  }
 0x27e   : > { %2343 = vmatprep.subr.bf16.mxu0 %v3669_v12  ;;  %2425 = vmatprep.subr.bf16.mxu1 %v3672_v13  ;;  %v3732_v11 = vld [vmem:[%s4153_s7 + $0xf8] sm:$0xff]  }
 0x27f   : > { %v3733_v12 = vld [vmem:[%s4153_s7 + $0x38] sm:$0xff]  }
 0x280   : > { %v3734_v13 = vld [vmem:[%s4153_s7 + $0xb8] sm:$0xff]  }
 0x281   : > { %2344 = vmatpush1.bf16.msra.mxu0 %v3667_v20  ;;  %2426 = vmatpush1.bf16.msra.mxu1 %v3670_v21  ;;  %v1625_v20 = vrot.slane %v1620_v19, %v3981_v15  ;;  %v1633_v21 = vrot.slane %v1620_v19, %v4003_v32 }
 0x282   : > { %2345 = vmatprep.subr.bf16.mxu0 %v3675_v22  ;;  %2427 = vmatprep.subr.bf16.mxu1 %v3678_v23  ;;  %v1629_v22 = vrot.slane %v1620_v19, %v3989_v17  ;;  %v1637_v23 = vrot.slane %v1620_v19, %v3992_v18 }
 0x285   : > { %2346 = vmatpush1.bf16.msra.mxu0 %v3673_v24  ;;  %2428 = vmatpush1.bf16.msra.mxu1 %v3676_v26 }
 0x286   : > { %2347 = vmatprep.subr.bf16.mxu0 %v3681_v27  ;;  %2429 = vmatprep.subr.bf16.mxu1 %v3684_v28 }
 0x289   : > { %2348 = vmatpush1.bf16.msra.mxu0 %v3679_v29  ;;  %2430 = vmatpush1.bf16.msra.mxu1 %v3682_v30 }
 0x28a   : > { %2349 = vmatprep.subr.bf16.mxu0 %v3687_v31  ;;  %2431 = vmatprep.subr.bf16.mxu1 %v3690_v33 }
 0x28d   : > { %2350 = vmatpush1.bf16.msra.mxu0 %v3685_v34  ;;  %2432 = vmatpush1.bf16.msra.mxu1 %v3688_v35 }
 0x28e   : > { %2351 = vmatprep.subr.bf16.mxu0 %v3693_v36  ;;  %2433 = vmatprep.subr.bf16.mxu1 %v3696_v37 }
 0x291   : > { %2352 = vmatpush1.bf16.msra.mxu0 %v3691_v39  ;;  %2434 = vmatpush1.bf16.msra.mxu1 %v3694_v40 }
 0x292   : > { %2353 = vmatprep.subr.bf16.mxu0 %v3699_v41  ;;  %2435 = vmatprep.subr.bf16.mxu1 %v3702_v14 }
 0x295   : > { %2354 = vmatpush1.bf16.msra.mxu0 %v3697_v44  ;;  %2436 = vmatpush1.bf16.msra.mxu1 %v3700_v45 }
 0x296   : > { %3215 = vmatprep.subr.bf16.mxu0 %v3703_v47  ;;  %3237 = vmatprep.subr.bf16.mxu1 %v3704_v49 }
 0x298   : > { %2356 = vmatmul.mubr.bf16.vlgmr.msra.gmra.mrb[8].mxu0 %v1490_v16  ;;  %2438 = vmatmul.mubr.bf16.vlgmr.msra.gmra.mrb[8].mxu1 %v1490_v16 }
 0x299   : > { %3216 = vmatpush3.bf16.msra.mxu0 %v3705_v25  ;;  %3238 = vmatpush3.bf16.msra.mxu1 %v3706_v50 }
 0x29a   : > { %3217 = vmatprep.subr.bf16.mxu0 %v3707_v51  ;;  %3239 = vmatprep.subr.bf16.mxu1 %v3708_v53 }
 0x29d   : > { %3218 = vmatpush3.bf16.msra.mxu0 %v3709_v54  ;;  %3240 = vmatpush3.bf16.msra.mxu1 %v3710_v55 }
 0x29e   : > { %3219 = vmatprep.subr.bf16.mxu0 %v3711_v56  ;;  %3241 = vmatprep.subr.bf16.mxu1 %v3712_v57 }
 0x2a1   : > { %3220 = vmatpush3.bf16.msra.mxu0 %v3713_v58  ;;  %3242 = vmatpush3.bf16.msra.mxu1 %v3714_v59 }
 0x2a2   : > { %3221 = vmatprep.subr.bf16.mxu0 %v3715_v48  ;;  %3243 = vmatprep.subr.bf16.mxu1 %v3716_v60 }
 0x2a5   : > { %3222 = vmatpush3.bf16.msra.mxu0 %v3717_v61  ;;  %3244 = vmatpush3.bf16.msra.mxu1 %v3718_v62 }
 0x2a6   : > { %3223 = vmatprep.subr.bf16.mxu0 %v3719_v52  ;;  %3245 = vmatprep.subr.bf16.mxu1 %v3720_v63 }
 0x2a9   : > { %3224 = vmatpush3.bf16.msra.mxu0 %v3721_v0  ;;  %3246 = vmatpush3.bf16.msra.mxu1 %v3722_v1 }
 0x2aa   : > { %3225 = vmatprep.subr.bf16.mxu0 %v3723_v2  ;;  %3247 = vmatprep.subr.bf16.mxu1 %v3724_v3 }
 0x2ad   : > { %3226 = vmatpush3.bf16.msra.mxu0 %v3725_v4  ;;  %3248 = vmatpush3.bf16.msra.mxu1 %v3726_v5 }
 0x2ae   : > { %3227 = vmatprep.subr.bf16.mxu0 %v3727_v6  ;;  %3249 = vmatprep.subr.bf16.mxu1 %v3728_v7 }
 0x2b1   : > { %3228 = vmatpush3.bf16.msra.mxu0 %v3729_v8  ;;  %3250 = vmatpush3.bf16.msra.mxu1 %v3730_v9  ;;  %v3180_v9 = vld [vmem:[%s4154_s8] ss:$0 sm:$0xff] }
 0x2b2   : > { %3229 = vmatprep.subr.bf16.mxu0 %v3731_v10  ;;  %3251 = vmatprep.subr.bf16.mxu1 %v3732_v11 }
 0x2b5   : > { %3230 = vmatpush3.bf16.msra.mxu0 %v3733_v12  ;;  %3252 = vmatpush3.bf16.msra.mxu1 %v3734_v13 }
 0x36b   : > { %v2357_v24 = vpop.f32.mrb[8].mxu0  ;;  %v2439_v26 = vpop.f32.mrb[8].mxu1 }
 0x36c   : > { %v3263_v27 = vadd.f32 %v2357_v24, %v1625_v20  ;;  %v3265_v28 = vadd.f32 %v2439_v26, %v1633_v21  ;;  %v2359_v29 = vpop.f32.mrb[9].mxu0  ;;  %v2441_v30 = vpop.f32.mrb[9].mxu1 }
 0x36d   : > { %v3264_v31 = vadd.f32 %v2359_v29, %v1629_v22  ;;  %v3266_v33 = vadd.f32 %v2441_v30, %v1637_v23  ;;  %v2361_v34 = vpop.f32.mrb[10].mxu0  ;;  %v2443_v35 = vpop.f32.mrb[10].mxu1 }
 0x36e   : > { %v2450_v36 = vmul.f32 %v3263_v27, %v3263_v27  ;;  %v2452_v37 = vmul.f32 %v3265_v28, %v3265_v28  ;;  %v2362_v38 = vpop.f32.mrb[11].mxu0  ;;  %v2444_v15 = vpop.f32.mrb[11].mxu1  ;;  %v2446_v57 = vmul.f32 0.5, %v3263_v27  ;;  %v2448_v48 = vmul.f32 0.5, %v3265_v28 }
 0x36f   : > { %v2451_v39 = vmul.f32 %v3264_v31, %v3264_v31  ;;  %v2453_v32 = vmul.f32 %v3266_v33, %v3266_v33  ;;  %v2447_v60 = vmul.f32 0.5, %v3264_v31  ;;  %v2449_v62 = vmul.f32 0.5, %v3266_v33 }
 0x370   : > { %v2454_v40 = vmul.f32 %v3263_v27, %v2450_v36  ;;  %v2456_v17 = vmul.f32 %v3265_v28, %v2452_v37 }
 0x371   : > { %v2455_v41 = vmul.f32 %v3264_v31, %v2451_v39  ;;  %v2457_v18 = vmul.f32 %v3266_v33, %v2453_v32 }
 0x372   : > { %v2458_v14 = vmul.f32 0.044715, %v2454_v40  ;;  %v2460_v42 = vmul.f32 0.044715, %v2456_v17 }
 0x373   : > { %v2459_v43 = vmul.f32 0.044715, %v2455_v41  ;;  %v2461_v44 = vmul.f32 0.044715, %v2457_v18 }
 0x374   : > { %v2462_v45 = vadd.f32 %v3263_v27, %v2458_v14  ;;  %v2464_v46 = vadd.f32 %v3265_v28, %v2460_v42 }
 0x375   : > { %v2463_v16 = vadd.f32 %v3264_v31, %v2459_v43  ;;  %v2465_v47 = vadd.f32 %v3266_v33, %v2461_v44 }
 0x376   : > { %v2466_v49 = vmul.f32 0.7978846, %v2462_v45  ;;  %v2468_v25 = vmul.f32 0.7978846, %v2464_v46 }
 0x377   : > { %v2467_v50 = vmul.f32 0.7978846, %v2463_v16  ;;  %v2469_v51 = vmul.f32 0.7978846, %v2465_v47 }
 0x378   : > { %3743 = vtanh.f32 %v2466_v49 }
 0x379   : > { %3745 = vtanh.f32 %v2468_v25 }
 0x37a   : > { %3747 = vtanh.f32 %v2467_v50 }
 0x37b   : > { %3749 = vtanh.f32 %v2469_v51 }
 0x382   : > { %v3744_v53 = vpop.eup %3743 }
 0x383   : > { %v3746_v54 = vpop.eup %3745  ;;  %v2474_v55 = vadd.f32 1.0, %v3744_v53 }
 0x384   : > { %v3748_v56 = vpop.eup %3747  ;;  %v2476_v58 = vadd.f32 1.0, %v3746_v54 }
 0x385   : > { %v3750_v59 = vpop.eup %3749  ;;  %v2475_v61 = vadd.f32 1.0, %v3748_v56  ;;  %v2478_v63 = vmul.f32 %v2474_v55, %v2446_v57 }
 0x386   : > { %v2477_v52 = vadd.f32 1.0, %v3750_v59  ;;  %v2480_v1 = vmul.f32 %v2476_v58, %v2448_v48 }
 0x387   : > { %v2479_v0 = vmul.f32 %v2475_v61, %v2447_v60  ;;  %v2482_v5 = vpack.c.bf16 %v2478_v63, %v2478_v63 }
 0x388   : > { %v2481_v2 = vmul.f32 %v2477_v52, %v2449_v62  ;;  %v2484_v6 = vpack.c.bf16 %v2480_v1, %v2480_v1 }
 0x389   : > { %v2483_v3 = vpack.c.bf16 %v2479_v0, %v2479_v0 }
 0x38a   : > { %v2485_v4 = vpack.c.bf16 %v2481_v2, %v2481_v2 }
 0x38b   : > { %2781 = vmatprep.mubr.bf16.mxu0 %v2483_v3 }
 0x38c   : > { %2821 = vmatprep.mubr.bf16.mxu1 %v2485_v4  ;;  %2782 = vmatmul.mubr.bf16.vlgmr.msra.gmra.mrb[12].mxu0 %v2482_v5 }
 0x38d   : > { %2822 = vmatmul.mubr.bf16.vlgmr.msra.gmra.mrb[12].mxu1 %v2484_v6 }
 0x45f   : > { %v3231_v7 = vpop.f32.mrb[12].mxu0 }
 0x460   : > { %v3253_v8 = vpop.f32.mrb[12].mxu1  ;;  %v3232_v10 = vpop.f32.mrb[13].mxu0 }
 0x461   : > { %v3233_v11 = vadd.f32 %v3232_v10, %v3231_v7  ;;  %v3254_v12 = vpop.f32.mrb[13].mxu1  ;;  %v3234_v13 = vpop.f32.mrb[14].mxu0 }
 0x462   : > { %v3255_v19 = vadd.f32 %v3254_v12, %v3253_v8  ;;  %v3256_v20 = vpop.f32.mrb[14].mxu1  ;;  %v3235_v21 = vpop.f32.mrb[15].mxu0 }
 0x463   : > { %v2784_v22 = vadd.f32 %v3233_v11, %v3180_v9  ;;  %v3257_v23 = vpop.f32.mrb[15].mxu1 }
 0x465   : > { %v2824_v24 = vadd.f32 %v3255_v19, %v2784_v22 }
 0x467   : > { %2829 = vst.msk [vmem:[%s357_s11] sm:$0xff] %vm395_vm1, %v2824_v24 }
 0x468 PF: > { %s21_s30 = sadd.s32 1, %s3821_s30  }
 0x469   : > { %p18_p5 = scmp.ge.s32.totalorder %s21_s30, 4  }
 0x46b   :  { %20 = sbr.rel (!%p18_p5) target bundleno = 2 (0x2), region = 95 }
 0x472   :  { %2849 = vsyncpa [#allocation3], 1 }
 0x473   :  { %2851 = vsyncpa [#allocation3 + $0x1], 1 }
 0x474   :  { %2852 = vsyncpa [#allocation5], 1 }

</bundles_post_ra>
